<compile_context>
chip_gen: v7x
topology: tpu7x:2x2x1
jax: 0.10.0
libtpu: 0.0.40
codegen_flags: <defaults>
</compile_context>

<pallas_src>
import functools

import numpy as np
import jax
import jax.numpy as jnp
from jax import lax
from jax.experimental import pallas as pl
from jax.experimental.pallas import tpu as pltpu

LANES = 128  # pad hidden- and class-dims to a full 128-lane width


# ----------------------------------------------------------------------------
# Fused per-task MAML kernel
# ----------------------------------------------------------------------------
def _fused_maml_task_kernel(update_lr, update_step, n_way,
                            xs_ref, ysoh_ref, xq_ref, yqoh_ref,
                            w1_ref, b1_ref, w2_ref, b2_ref,
                            loss_ref, corr_ref):
    """One grid step == one task: inner-loop SGD + query evals, all in VMEM.

    Weight layout (zero-padded to 128 lanes; padding provably stays zero through
    relu / softmax-masking / backprop / SGD):
        w1: (D, 128)   b1: (1, 128)   w2: (128, 128)   b2: (1, 128)
    """
    xs = xs_ref[0]          # (setsz, D)
    ys_oh = ysoh_ref[0]     # (setsz, 128) one-hot labels (padded lanes are 0)
    xq = xq_ref[0]          # (querysz, D)
    yq_oh = yqoh_ref[0]     # (querysz, 128)

    meta_w = (w1_ref[...], b1_ref[...], w2_ref[...], b2_ref[...])

    n_spt = xs.shape[0]
    n_qry = xq.shape[0]

    lane = lax.broadcasted_iota(jnp.int32, (1, LANES), 1)
    class_mask = lane < n_way                       # (1, 128)

    def forward(w, x):
        w1, b1, w2, b2 = w
        pre = lax.dot_general(x, w1, (((1,), (0,)), ((), ())),
                              preferred_element_type=jnp.float32) + b1
        h = jnp.maximum(pre, 0.0)                   # padded hidden lanes stay 0
        logits = lax.dot_general(h, w2, (((1,), (0,)), ((), ())),
                                 preferred_element_type=jnp.float32) + b2
        return logits, h

    def grads_and_update(w, x, onehot):
        """Forward + softmax + manual backprop of mean CE + fused SGD step."""
        w1, b1, w2, b2 = w
        logits, h = forward(w, x)
        masked = jnp.where(class_mask, logits, -1e30)
        m = jnp.max(masked, axis=1, keepdims=True)
        e = jnp.exp(masked - m)                     # padded lanes -> 0
        s = jnp.sum(e, axis=1, keepdims=True)
        probs = e / s
        dlog = (probs - onehot) * (1.0 / n_spt)     # d(loss)/d(logits)

        # Gradients via dot_general contractions (no explicit transposes).
        dw2 = lax.dot_general(h, dlog, (((0,), (0,)), ((), ())),
                              preferred_element_type=jnp.float32)
        db2 = jnp.sum(dlog, axis=0, keepdims=True)
        dh = lax.dot_general(dlog, w2, (((1,), (1,)), ((), ())),
                             preferred_element_type=jnp.float32)
        dpre = jnp.where(h > 0.0, dh, 0.0)          # relu' (0 at kink, PyTorch-like)
        dw1 = lax.dot_general(x, dpre, (((0,), (0,)), ((), ())),
                              preferred_element_type=jnp.float32)
        db1 = jnp.sum(dpre, axis=0, keepdims=True)

        # Fused inner-loop SGD update.
        return (w1 - update_lr * dw1, b1 - update_lr * db1,
                w2 - update_lr * dw2, b2 - update_lr * db2)

    def eval_query(w):
        logits, _ = forward(w, xq)
        masked = jnp.where(class_mask, logits, -1e30)
        m = jnp.max(masked, axis=1, keepdims=True)
        e = jnp.exp(masked - m)
        s = jnp.sum(e, axis=1, keepdims=True)
        lse = m + jnp.log(s)
        true_logit = jnp.sum(yq_oh * logits, axis=1, keepdims=True)
        loss = jnp.sum(lse - true_logit, axis=0, keepdims=True) * (1.0 / n_qry)
        # argmax(softmax(logits)) == y  <=>  true-class logit attains the row max
        correct = jnp.sum((true_logit >= m).astype(jnp.float32),
                          axis=0, keepdims=True)
        return loss, correct                        # each (1, 1)

    losses = []
    corrects = []

    # First inner step from meta-parameters.
    fast = grads_and_update(meta_w, xs, ys_oh)
    l0, c0 = eval_query(meta_w)
    l1, c1 = eval_query(fast)
    losses += [l0, l1]
    corrects += [c0, c1]

    # Remaining inner steps (statically unrolled; update_step is small & static).
    for _ in range(1, update_step):
        fast = grads_and_update(fast, xs, ys_oh)
        lk, ck = eval_query(fast)
        losses.append(lk)
        corrects.append(ck)

    # Scatter the (update_step+1) scalars into lane-dense 128-wide output rows.
    loss_row = jnp.zeros((1, LANES), jnp.float32)
    corr_row = jnp.zeros((1, LANES), jnp.float32)
    for k in range(update_step + 1):
        sel = (lane == k).astype(jnp.float32)       # (1, 128)
        loss_row = loss_row + losses[k] * sel
        corr_row = corr_row + corrects[k] * sel
    loss_ref[0] = loss_row
    corr_ref[0] = corr_row


# ----------------------------------------------------------------------------
# Jitted wrapper: padding, one fused pallas_call, tiny cross-task reduction.
# ----------------------------------------------------------------------------
@functools.partial(jax.jit, static_argnames=("update_lr", "update_step", "n_way"))
def maml_forward(params, x_spt, y_spt, x_qry, y_qry, *,
                 update_lr, update_step, n_way):
    w1, b1, w2, b2 = params
    task_num, setsz = x_spt.shape[0], x_spt.shape[1]
    querysz = x_qry.shape[1]
    d = int(np.prod(x_spt.shape[2:]))
    hid = w1.shape[1]

    xs = x_spt.reshape(task_num, setsz, d).astype(jnp.float32)
    xq = x_qry.reshape(task_num, querysz, d).astype(jnp.float32)
    # One-hot labels directly at the padded lane width (padding lanes stay 0).
    ys_oh = jax.nn.one_hot(y_spt.astype(jnp.int32), LANES, dtype=jnp.float32)
    yq_oh = jax.nn.one_hot(y_qry.astype(jnp.int32), LANES, dtype=jnp.float32)

    # Zero-pad weights to 128 lanes (hidden and class dims).
    w1p = jnp.zeros((d, LANES), jnp.float32).at[:, :hid].set(w1)
    b1p = jnp.zeros((1, LANES), jnp.float32).at[:, :hid].set(b1)
    w2p = jnp.zeros((LANES, LANES), jnp.float32).at[:hid, :n_way].set(w2)
    b2p = jnp.zeros((1, LANES), jnp.float32).at[:, :n_way].set(b2)

    kernel = functools.partial(_fused_maml_task_kernel,
                               float(update_lr), int(update_step), int(n_way))

    loss_pt, corr_pt = pl.pallas_call(
        kernel,
        out_shape=(
            jax.ShapeDtypeStruct((task_num, 1, LANES), jnp.float32),
            jax.ShapeDtypeStruct((task_num, 1, LANES), jnp.float32),
        ),
        grid_spec=pltpu.PrefetchScalarGridSpec(
            num_scalar_prefetch=0,
            grid=(task_num,),
            in_specs=[
                pl.BlockSpec((1, setsz, d), lambda i: (i, 0, 0)),
                pl.BlockSpec((1, setsz, LANES), lambda i: (i, 0, 0)),
                pl.BlockSpec((1, querysz, d), lambda i: (i, 0, 0)),
                pl.BlockSpec((1, querysz, LANES), lambda i: (i, 0, 0)),
                pl.BlockSpec((d, LANES), lambda i: (0, 0)),
                pl.BlockSpec((1, LANES), lambda i: (0, 0)),
                pl.BlockSpec((LANES, LANES), lambda i: (0, 0)),
                pl.BlockSpec((1, LANES), lambda i: (0, 0)),
            ],
            out_specs=(
                pl.BlockSpec((1, 1, LANES), lambda i: (i, 0, 0)),
                pl.BlockSpec((1, 1, LANES), lambda i: (i, 0, 0)),
            ),
        ),
        compiler_params=pltpu.CompilerParams(
            dimension_semantics=("parallel",)),   # tasks shard across v7x TCs
    )(xs, ys_oh, xq, yq_oh, w1p, b1p, w2p, b2p)

    s1 = update_step + 1
    losses = jnp.sum(loss_pt[:, 0, :s1], axis=0) / task_num
    accs = jnp.sum(corr_pt[:, 0, :s1], axis=0) / (querysz * task_num)
    return losses, accs


class MetaLearnerPallas:
    """MAML forward() (inner loops + query evaluation) as one fused Pallas kernel."""

    def __init__(self, params, update_lr=0.4, update_step=3, n_way=4):
        self.params = tuple(params)          # (w1, b1, w2, b2)
        self.update_lr = float(update_lr)
        self.update_step = int(update_step)
        self.n_way = int(n_way)

    def forward(self, x_spt, y_spt, x_qry, y_qry):
        # TODO(synk): outer AdamW meta-update (second-order backprop through the
        # inner loop + optimizer-state mutation) is not implemented; the returned
        # (losses, accs) in the PyTorch module are computed before that step and
        # do not depend on it.
        return maml_forward(self.params, x_spt, y_spt, x_qry, y_qry,
                            update_lr=self.update_lr,
                            update_step=self.update_step,
                            n_way=self.n_way)


# ----------------------------------------------------------------------------
# Pure-JAX reference (jax.grad through a plain MLP) for correctness check
# ----------------------------------------------------------------------------
def _ref_net(weights, x):
    w1, b1, w2, b2 = weights
    h = jnp.maximum(jnp.dot(x, w1, precision="highest") + b1, 0.0)
    return jnp.dot(h, w2, precision="highest") + b2


def _cross_entropy(logits, y):
    lse = jax.scipy.special.logsumexp(logits, axis=1)
    picked = jnp.take_along_axis(logits, y[:, None], axis=1)[:, 0]
    return jnp.mean(lse - picked)


def _ref_forward(params, x_spt, y_spt, x_qry, y_qry, update_lr, update_step, n_way):
    task_num, setsz = x_spt.shape[0], x_spt.shape[1]
    querysz = x_qry.shape[1]
    d = int(np.prod(x_spt.shape[2:]))

    def loss_fn(ws, x, y):
        return _cross_entropy(_ref_net(ws, x), y)

    grad_fn = jax.grad(loss_fn)
    losses_q = [0.0 for _ in range(update_step + 1)]
    corrects = [0 for _ in range(update_step + 1)]

    def evalq(ws, xq, yq):
        logits = _ref_net(ws, xq)
        pred = jnp.argmax(jax.nn.softmax(logits, axis=1), axis=1)
        return _cross_entropy(logits, yq), jnp.sum(pred == yq)

    for i in range(task_num):
        xs = x_spt[i].reshape(setsz, d).astype(jnp.float32)
        xq = x_qry[i].reshape(querysz, d).astype(jnp.float32)
        ys = y_spt[i].astype(jnp.int32)
        yq = y_qry[i].astype(jnp.int32)

        g = grad_fn(list(params), xs, ys)
        fast = [p - update_lr * gi for p, gi in zip(params, g)]
        l0, c0 = evalq(list(params), xq, yq)
        l1, c1 = evalq(fast, xq, yq)
        losses_q[0] += l0; corrects[0] += c0
        losses_q[1] += l1; corrects[1] += c1
        for k in range(1, update_step):
            g = grad_fn(fast, xs, ys)
            fast = [p - update_lr * gi for p, gi in zip(fast, g)]
            lk, ck = evalq(fast, xq, yq)
            losses_q[k + 1] += lk; corrects[k + 1] += ck

    losses = np.array([float(l) / task_num for l in losses_q])
    accs = np.array([int(c) for c in corrects]) / (querysz * task_num)
    return losses, accs


# ----------------------------------------------------------------------------
if __name__ == "__main__":
    # MAML-style toy shapes: task_num=2, n_way=4, k_spt=k_qry=2 -> setsz=querysz=8,
    # images [1, 8, 8] -> D=64, hidden=32, 3 inner steps.
    task_num, n_way, k_spt, k_qry = 2, 4, 2, 2
    C, H, W = 1, 8, 8
    setsz, querysz = n_way * k_spt, n_way * k_qry
    D, HID = C * H * W, 32
    update_lr, update_step = 0.4, 3

    key = jax.random.PRNGKey(0)
    k1, k2, k3, k4, k5, k6 = jax.random.split(key, 6)

    # Deterministic Learner parameters (2-layer MLP head).
    w1 = jax.random.normal(k1, (D, HID), dtype=jnp.float32) * np.sqrt(2.0 / D)
    b1 = jnp.zeros((1, HID), dtype=jnp.float32)
    w2 = jax.random.normal(k2, (HID, n_way), dtype=jnp.float32) * np.sqrt(2.0 / HID)
    b2 = jnp.zeros((1, n_way), dtype=jnp.float32)
    params = (w1, b1, w2, b2)

    x_spt = jax.random.normal(k3, (task_num, setsz, C, H, W), dtype=jnp.float32)
    y_spt = jax.random.randint(k4, (task_num, setsz), 0, n_way, dtype=jnp.int32)
    x_qry = jax.random.normal(k5, (task_num, querysz, C, H, W), dtype=jnp.float32)
    y_qry = jax.random.randint(k6, (task_num, querysz), 0, n_way, dtype=jnp.int32)

    learner = MetaLearnerPallas(params, update_lr=update_lr,
                                update_step=update_step, n_way=n_way)
    losses, accs = learner.forward(x_spt, y_spt, x_qry, y_qry)
    losses = jax.block_until_ready(losses)
    accs = jax.block_until_ready(accs)

    # Correctness check against a pure-JAX (autodiff) reference.
    ref_losses, ref_accs = _ref_forward(params, x_spt, y_spt, x_qry, y_qry,
                                        update_lr, update_step, n_way)
    np.testing.assert_allclose(np.asarray(losses), ref_losses, rtol=2e-3, atol=2e-3)
    np.testing.assert_allclose(np.asarray(accs), ref_accs, rtol=0, atol=1e-6)

    print("KERNEL_OK")
</pallas_src>

<mosaic_0001>
module attributes {stable_mosaic.version = 11 : i64} {
  func.func @_fused_maml_task_kernel(%arg0: i32, %arg1: memref<1x8x64xf32, #tpu.memory_space<vmem>>, %arg2: memref<1x8x128xf32, #tpu.memory_space<vmem>>, %arg3: memref<1x8x64xf32, #tpu.memory_space<vmem>>, %arg4: memref<1x8x128xf32, #tpu.memory_space<vmem>>, %arg5: memref<64x128xf32, #tpu.memory_space<vmem>>, %arg6: memref<1x128xf32, #tpu.memory_space<vmem>>, %arg7: memref<128x128xf32, #tpu.memory_space<vmem>>, %arg8: memref<1x128xf32, #tpu.memory_space<vmem>>, %arg9: memref<1x1x128xf32, #tpu.memory_space<vmem>>, %arg10: memref<1x1x128xf32, #tpu.memory_space<vmem>>) attributes {dimension_semantics = [#tpu.dimension_semantics<parallel>], iteration_bounds = array<i64: 2>, scalar_prefetch = 0 : i64, scratch_operands = 0 : i64, tpu.core_type = #tpu.core_type<tc>, window_params = [{transform_indices = @transform_0, window_bounds = array<i64: 1, 8, 64>}, {transform_indices = @transform_1, window_bounds = array<i64: 1, 8, 128>}, {transform_indices = @transform_2, window_bounds = array<i64: 1, 8, 64>}, {transform_indices = @transform_3, window_bounds = array<i64: 1, 8, 128>}, {pipeline_mode = #tpu.pipeline_mode<synchronous>, transform_indices = @transform_4, window_bounds = array<i64: 64, 128>}, {pipeline_mode = #tpu.pipeline_mode<synchronous>, transform_indices = @transform_5, window_bounds = array<i64: 1, 128>}, {pipeline_mode = #tpu.pipeline_mode<synchronous>, transform_indices = @transform_6, window_bounds = array<i64: 128, 128>}, {pipeline_mode = #tpu.pipeline_mode<synchronous>, transform_indices = @transform_7, window_bounds = array<i64: 1, 128>}, {transform_indices = @transform_8, window_bounds = array<i64: 1, 1, 128>}, {transform_indices = @transform_9, window_bounds = array<i64: 1, 1, 128>}]} {
    %c0 = arith.constant 0 : index
    %c0_0 = arith.constant 0 : index
    %c0_1 = arith.constant 0 : index
    %0 = vector.load %arg1[%c0, %c0_0, %c0_1] : memref<1x8x64xf32, #tpu.memory_space<vmem>>, vector<1x8x64xf32>
    %1 = vector.shape_cast %0 : vector<1x8x64xf32> to vector<8x64xf32>
    %c0_2 = arith.constant 0 : index
    %c0_3 = arith.constant 0 : index
    %c0_4 = arith.constant 0 : index
    %2 = vector.load %arg2[%c0_2, %c0_3, %c0_4] : memref<1x8x128xf32, #tpu.memory_space<vmem>>, vector<1x8x128xf32>
    %3 = vector.shape_cast %2 : vector<1x8x128xf32> to vector<8x128xf32>
    %c0_5 = arith.constant 0 : index
    %c0_6 = arith.constant 0 : index
    %c0_7 = arith.constant 0 : index
    %4 = vector.load %arg3[%c0_5, %c0_6, %c0_7] : memref<1x8x64xf32, #tpu.memory_space<vmem>>, vector<1x8x64xf32>
    %5 = vector.shape_cast %4 : vector<1x8x64xf32> to vector<8x64xf32>
    %c0_8 = arith.constant 0 : index
    %c0_9 = arith.constant 0 : index
    %c0_10 = arith.constant 0 : index
    %6 = vector.load %arg4[%c0_8, %c0_9, %c0_10] : memref<1x8x128xf32, #tpu.memory_space<vmem>>, vector<1x8x128xf32>
    %7 = vector.shape_cast %6 : vector<1x8x128xf32> to vector<8x128xf32>
    %c0_11 = arith.constant 0 : index
    %c0_12 = arith.constant 0 : index
    %8 = vector.load %arg5[%c0_11, %c0_12] : memref<64x128xf32, #tpu.memory_space<vmem>>, vector<64x128xf32>
    %c0_13 = arith.constant 0 : index
    %c0_14 = arith.constant 0 : index
    %9 = vector.load %arg6[%c0_13, %c0_14] : memref<1x128xf32, #tpu.memory_space<vmem>>, vector<1x128xf32>
    %c0_15 = arith.constant 0 : index
    %c0_16 = arith.constant 0 : index
    %10 = vector.load %arg7[%c0_15, %c0_16] : memref<128x128xf32, #tpu.memory_space<vmem>>, vector<128x128xf32>
    %c0_17 = arith.constant 0 : index
    %c0_18 = arith.constant 0 : index
    %11 = vector.load %arg8[%c0_17, %c0_18] : memref<1x128xf32, #tpu.memory_space<vmem>>, vector<1x128xf32>
    %12 = tpu.iota {dimensions = array<i32: 1>} : vector<1x128xi32>
    %c4_i32 = arith.constant 4 : i32
    %13 = vector.broadcast %c4_i32 : i32 to vector<1x128xi32>
    %14 = arith.cmpi slt, %12, %13 : vector<1x128xi32>
    %cst = arith.constant dense<0.000000e+00> : vector<8x128xf32>
    %15 = tpu.matmul %1, %8, %cst {dimension_numbers = #tpu.dot_dimension_numbers<[1], [0], [0], [1], [0, 0, 1, 1], [], []>} : vector<8x64xf32>, vector<64x128xf32>, vector<8x128xf32> -> vector<8x128xf32>
    %16 = vector.broadcast %9 : vector<1x128xf32> to vector<8x128xf32>
    %17 = arith.addf %15, %16 : vector<8x128xf32>
    %cst_19 = arith.constant 0.000000e+00 : f32
    %18 = vector.broadcast %cst_19 : f32 to vector<8x128xf32>
    %19 = arith.maximumf %17, %18 : vector<8x128xf32>
    %cst_20 = arith.constant dense<0.000000e+00> : vector<8x128xf32>
    %20 = tpu.matmul %19, %10, %cst_20 {dimension_numbers = #tpu.dot_dimension_numbers<[1], [0], [0], [1], [0, 0, 1, 1], [], []>} : vector<8x128xf32>, vector<128x128xf32>, vector<8x128xf32> -> vector<8x128xf32>
    %21 = vector.broadcast %11 : vector<1x128xf32> to vector<8x128xf32>
    %22 = arith.addf %20, %21 : vector<8x128xf32>
    %cst_21 = arith.constant -1.000000e+30 : f32
    %23 = vector.shape_cast %14 : vector<1x128xi1> to vector<1x128xi1>
    %24 = vector.broadcast %23 : vector<1x128xi1> to vector<8x128xi1>
    %25 = vector.broadcast %cst_21 : f32 to vector<8x128xf32>
    %26 = arith.select %24, %22, %25 : vector<8x128xi1>, vector<8x128xf32>
    %cst_22 = arith.constant dense<0xFF800000> : vector<8xf32>
    %27 = vector.multi_reduction <maximumf>, %26, %cst_22 [1] : vector<8x128xf32> to vector<8xf32>
    %28 = vector.shape_cast %27 : vector<8xf32> to vector<8x1xf32>
    %29 = vector.broadcast %28 : vector<8x1xf32> to vector<8x128xf32>
    %30 = arith.subf %26, %29 : vector<8x128xf32>
    %31 = math.exp %30 : vector<8x128xf32>
    %cst_23 = arith.constant dense<0.000000e+00> : vector<8xf32>
    %32 = vector.multi_reduction <add>, %31, %cst_23 [1] : vector<8x128xf32> to vector<8xf32>
    %33 = vector.shape_cast %32 : vector<8xf32> to vector<8x1xf32>
    %34 = vector.broadcast %33 : vector<8x1xf32> to vector<8x128xf32>
    %35 = arith.divf %31, %34 : vector<8x128xf32>
    %36 = arith.subf %35, %3 : vector<8x128xf32>
    %cst_24 = arith.constant 1.250000e-01 : f32
    %37 = vector.broadcast %cst_24 : f32 to vector<8x128xf32>
    %38 = arith.mulf %36, %37 : vector<8x128xf32>
    %cst_25 = arith.constant dense<0.000000e+00> : vector<128x128xf32>
    %39 = tpu.matmul %19, %38, %cst_25 {dimension_numbers = #tpu.dot_dimension_numbers<[0], [0], [1], [1], [0, 1, 1, 1], [], []>} : vector<8x128xf32>, vector<8x128xf32>, vector<128x128xf32> -> vector<128x128xf32>
    %cst_26 = arith.constant dense<0.000000e+00> : vector<128xf32>
    %40 = vector.multi_reduction <add>, %38, %cst_26 [0] : vector<8x128xf32> to vector<128xf32>
    %41 = vector.shape_cast %40 : vector<128xf32> to vector<1x128xf32>
    %cst_27 = arith.constant dense<0.000000e+00> : vector<8x128xf32>
    %42 = tpu.matmul %38, %10, %cst_27 {dimension_numbers = #tpu.dot_dimension_numbers<[1], [1], [0], [0], [0, 0, 1, 0], [], []>} : vector<8x128xf32>, vector<128x128xf32>, vector<8x128xf32> -> vector<8x128xf32>
    %cst_28 = arith.constant 0.000000e+00 : f32
    %43 = vector.broadcast %cst_28 : f32 to vector<8x128xf32>
    %44 = arith.cmpf ogt, %19, %43 : vector<8x128xf32>
    %cst_29 = arith.constant 0.000000e+00 : f32
    %45 = vector.broadcast %cst_29 : f32 to vector<8x128xf32>
    %46 = arith.select %44, %42, %45 : vector<8x128xi1>, vector<8x128xf32>
    %cst_30 = arith.constant dense<0.000000e+00> : vector<64x128xf32>
    %47 = tpu.matmul %1, %46, %cst_30 {dimension_numbers = #tpu.dot_dimension_numbers<[0], [0], [1], [1], [0, 1, 1, 1], [], []>} : vector<8x64xf32>, vector<8x128xf32>, vector<64x128xf32> -> vector<64x128xf32>
    %cst_31 = arith.constant dense<0.000000e+00> : vector<128xf32>
    %48 = vector.multi_reduction <add>, %46, %cst_31 [0] : vector<8x128xf32> to vector<128xf32>
    %49 = vector.shape_cast %48 : vector<128xf32> to vector<1x128xf32>
    %cst_32 = arith.constant 4.000000e-01 : f32
    %50 = vector.broadcast %cst_32 : f32 to vector<64x128xf32>
    %51 = arith.mulf %50, %47 : vector<64x128xf32>
    %52 = arith.subf %8, %51 : vector<64x128xf32>
    %cst_33 = arith.constant 4.000000e-01 : f32
    %53 = vector.broadcast %cst_33 : f32 to vector<1x128xf32>
    %54 = arith.mulf %53, %49 : vector<1x128xf32>
    %55 = arith.subf %9, %54 : vector<1x128xf32>
    %cst_34 = arith.constant 4.000000e-01 : f32
    %56 = vector.broadcast %cst_34 : f32 to vector<128x128xf32>
    %57 = arith.mulf %56, %39 : vector<128x128xf32>
    %58 = arith.subf %10, %57 : vector<128x128xf32>
    %cst_35 = arith.constant 4.000000e-01 : f32
    %59 = vector.broadcast %cst_35 : f32 to vector<1x128xf32>
    %60 = arith.mulf %59, %41 : vector<1x128xf32>
    %61 = arith.subf %11, %60 : vector<1x128xf32>
    %cst_36 = arith.constant dense<0.000000e+00> : vector<8x128xf32>
    %62 = tpu.matmul %5, %8, %cst_36 {dimension_numbers = #tpu.dot_dimension_numbers<[1], [0], [0], [1], [0, 0, 1, 1], [], []>} : vector<8x64xf32>, vector<64x128xf32>, vector<8x128xf32> -> vector<8x128xf32>
    %63 = vector.broadcast %9 : vector<1x128xf32> to vector<8x128xf32>
    %64 = arith.addf %62, %63 : vector<8x128xf32>
    %cst_37 = arith.constant 0.000000e+00 : f32
    %65 = vector.broadcast %cst_37 : f32 to vector<8x128xf32>
    %66 = arith.maximumf %64, %65 : vector<8x128xf32>
    %cst_38 = arith.constant dense<0.000000e+00> : vector<8x128xf32>
    %67 = tpu.matmul %66, %10, %cst_38 {dimension_numbers = #tpu.dot_dimension_numbers<[1], [0], [0], [1], [0, 0, 1, 1], [], []>} : vector<8x128xf32>, vector<128x128xf32>, vector<8x128xf32> -> vector<8x128xf32>
    %68 = vector.broadcast %11 : vector<1x128xf32> to vector<8x128xf32>
    %69 = arith.addf %67, %68 : vector<8x128xf32>
    %cst_39 = arith.constant -1.000000e+30 : f32
    %70 = vector.shape_cast %14 : vector<1x128xi1> to vector<1x128xi1>
    %71 = vector.broadcast %70 : vector<1x128xi1> to vector<8x128xi1>
    %72 = vector.broadcast %cst_39 : f32 to vector<8x128xf32>
    %73 = arith.select %71, %69, %72 : vector<8x128xi1>, vector<8x128xf32>
    %cst_40 = arith.constant dense<0xFF800000> : vector<8xf32>
    %74 = vector.multi_reduction <maximumf>, %73, %cst_40 [1] : vector<8x128xf32> to vector<8xf32>
    %75 = vector.shape_cast %74 : vector<8xf32> to vector<8x1xf32>
    %76 = vector.broadcast %75 : vector<8x1xf32> to vector<8x128xf32>
    %77 = arith.subf %73, %76 : vector<8x128xf32>
    %78 = math.exp %77 : vector<8x128xf32>
    %cst_41 = arith.constant dense<0.000000e+00> : vector<8xf32>
    %79 = vector.multi_reduction <add>, %78, %cst_41 [1] : vector<8x128xf32> to vector<8xf32>
    %80 = vector.shape_cast %79 : vector<8xf32> to vector<8x1xf32>
    %81 = math.log %80 : vector<8x1xf32>
    %82 = arith.addf %75, %81 : vector<8x1xf32>
    %83 = arith.mulf %7, %69 : vector<8x128xf32>
    %cst_42 = arith.constant dense<0.000000e+00> : vector<8xf32>
    %84 = vector.multi_reduction <add>, %83, %cst_42 [1] : vector<8x128xf32> to vector<8xf32>
    %85 = vector.shape_cast %84 : vector<8xf32> to vector<8x1xf32>
    %86 = arith.subf %82, %85 : vector<8x1xf32>
    %cst_43 = arith.constant dense<0.000000e+00> : vector<1xf32>
    %87 = vector.multi_reduction <add>, %86, %cst_43 [0] : vector<8x1xf32> to vector<1xf32>
    %88 = vector.shape_cast %87 : vector<1xf32> to vector<1x1xf32>
    %cst_44 = arith.constant 1.250000e-01 : f32
    %89 = vector.broadcast %cst_44 : f32 to vector<1x1xf32>
    %90 = arith.mulf %88, %89 : vector<1x1xf32>
    %91 = arith.cmpf oge, %85, %75 : vector<8x1xf32>
    %92 = arith.extui %91 : vector<8x1xi1> to vector<8x1xi32>
    %93 = arith.sitofp %92 : vector<8x1xi32> to vector<8x1xf32>
    %cst_45 = arith.constant dense<0.000000e+00> : vector<1xf32>
    %94 = vector.multi_reduction <add>, %93, %cst_45 [0] : vector<8x1xf32> to vector<1xf32>
    %95 = vector.shape_cast %94 : vector<1xf32> to vector<1x1xf32>
    %cst_46 = arith.constant dense<0.000000e+00> : vector<8x128xf32>
    %96 = tpu.matmul %5, %52, %cst_46 {dimension_numbers = #tpu.dot_dimension_numbers<[1], [0], [0], [1], [0, 0, 1, 1], [], []>} : vector<8x64xf32>, vector<64x128xf32>, vector<8x128xf32> -> vector<8x128xf32>
    %97 = vector.broadcast %55 : vector<1x128xf32> to vector<8x128xf32>
    %98 = arith.addf %96, %97 : vector<8x128xf32>
    %cst_47 = arith.constant 0.000000e+00 : f32
    %99 = vector.broadcast %cst_47 : f32 to vector<8x128xf32>
    %100 = arith.maximumf %98, %99 : vector<8x128xf32>
    %cst_48 = arith.constant dense<0.000000e+00> : vector<8x128xf32>
    %101 = tpu.matmul %100, %58, %cst_48 {dimension_numbers = #tpu.dot_dimension_numbers<[1], [0], [0], [1], [0, 0, 1, 1], [], []>} : vector<8x128xf32>, vector<128x128xf32>, vector<8x128xf32> -> vector<8x128xf32>
    %102 = vector.broadcast %61 : vector<1x128xf32> to vector<8x128xf32>
    %103 = arith.addf %101, %102 : vector<8x128xf32>
    %cst_49 = arith.constant -1.000000e+30 : f32
    %104 = vector.shape_cast %14 : vector<1x128xi1> to vector<1x128xi1>
    %105 = vector.broadcast %104 : vector<1x128xi1> to vector<8x128xi1>
    %106 = vector.broadcast %cst_49 : f32 to vector<8x128xf32>
    %107 = arith.select %105, %103, %106 : vector<8x128xi1>, vector<8x128xf32>
    %cst_50 = arith.constant dense<0xFF800000> : vector<8xf32>
    %108 = vector.multi_reduction <maximumf>, %107, %cst_50 [1] : vector<8x128xf32> to vector<8xf32>
    %109 = vector.shape_cast %108 : vector<8xf32> to vector<8x1xf32>
    %110 = vector.broadcast %109 : vector<8x1xf32> to vector<8x128xf32>
    %111 = arith.subf %107, %110 : vector<8x128xf32>
    %112 = math.exp %111 : vector<8x128xf32>
    %cst_51 = arith.constant dense<0.000000e+00> : vector<8xf32>
    %113 = vector.multi_reduction <add>, %112, %cst_51 [1] : vector<8x128xf32> to vector<8xf32>
    %114 = vector.shape_cast %113 : vector<8xf32> to vector<8x1xf32>
    %115 = math.log %114 : vector<8x1xf32>
    %116 = arith.addf %109, %115 : vector<8x1xf32>
    %117 = arith.mulf %7, %103 : vector<8x128xf32>
    %cst_52 = arith.constant dense<0.000000e+00> : vector<8xf32>
    %118 = vector.multi_reduction <add>, %117, %cst_52 [1] : vector<8x128xf32> to vector<8xf32>
    %119 = vector.shape_cast %118 : vector<8xf32> to vector<8x1xf32>
    %120 = arith.subf %116, %119 : vector<8x1xf32>
    %cst_53 = arith.constant dense<0.000000e+00> : vector<1xf32>
    %121 = vector.multi_reduction <add>, %120, %cst_53 [0] : vector<8x1xf32> to vector<1xf32>
    %122 = vector.shape_cast %121 : vector<1xf32> to vector<1x1xf32>
    %cst_54 = arith.constant 1.250000e-01 : f32
    %123 = vector.broadcast %cst_54 : f32 to vector<1x1xf32>
    %124 = arith.mulf %122, %123 : vector<1x1xf32>
    %125 = arith.cmpf oge, %119, %109 : vector<8x1xf32>
    %126 = arith.extui %125 : vector<8x1xi1> to vector<8x1xi32>
    %127 = arith.sitofp %126 : vector<8x1xi32> to vector<8x1xf32>
    %cst_55 = arith.constant dense<0.000000e+00> : vector<1xf32>
    %128 = vector.multi_reduction <add>, %127, %cst_55 [0] : vector<8x1xf32> to vector<1xf32>
    %129 = vector.shape_cast %128 : vector<1xf32> to vector<1x1xf32>
    %cst_56 = arith.constant dense<0.000000e+00> : vector<8x128xf32>
    %130 = tpu.matmul %1, %52, %cst_56 {dimension_numbers = #tpu.dot_dimension_numbers<[1], [0], [0], [1], [0, 0, 1, 1], [], []>} : vector<8x64xf32>, vector<64x128xf32>, vector<8x128xf32> -> vector<8x128xf32>
    %131 = vector.broadcast %55 : vector<1x128xf32> to vector<8x128xf32>
    %132 = arith.addf %130, %131 : vector<8x128xf32>
    %cst_57 = arith.constant 0.000000e+00 : f32
    %133 = vector.broadcast %cst_57 : f32 to vector<8x128xf32>
    %134 = arith.maximumf %132, %133 : vector<8x128xf32>
    %cst_58 = arith.constant dense<0.000000e+00> : vector<8x128xf32>
    %135 = tpu.matmul %134, %58, %cst_58 {dimension_numbers = #tpu.dot_dimension_numbers<[1], [0], [0], [1], [0, 0, 1, 1], [], []>} : vector<8x128xf32>, vector<128x128xf32>, vector<8x128xf32> -> vector<8x128xf32>
    %136 = vector.broadcast %61 : vector<1x128xf32> to vector<8x128xf32>
    %137 = arith.addf %135, %136 : vector<8x128xf32>
    %cst_59 = arith.constant -1.000000e+30 : f32
    %138 = vector.shape_cast %14 : vector<1x128xi1> to vector<1x128xi1>
    %139 = vector.broadcast %138 : vector<1x128xi1> to vector<8x128xi1>
    %140 = vector.broadcast %cst_59 : f32 to vector<8x128xf32>
    %141 = arith.select %139, %137, %140 : vector<8x128xi1>, vector<8x128xf32>
    %cst_60 = arith.constant dense<0xFF800000> : vector<8xf32>
    %142 = vector.multi_reduction <maximumf>, %141, %cst_60 [1] : vector<8x128xf32> to vector<8xf32>
    %143 = vector.shape_cast %142 : vector<8xf32> to vector<8x1xf32>
    %144 = vector.broadcast %143 : vector<8x1xf32> to vector<8x128xf32>
    %145 = arith.subf %141, %144 : vector<8x128xf32>
    %146 = math.exp %145 : vector<8x128xf32>
    %cst_61 = arith.constant dense<0.000000e+00> : vector<8xf32>
    %147 = vector.multi_reduction <add>, %146, %cst_61 [1] : vector<8x128xf32> to vector<8xf32>
    %148 = vector.shape_cast %147 : vector<8xf32> to vector<8x1xf32>
    %149 = vector.broadcast %148 : vector<8x1xf32> to vector<8x128xf32>
    %150 = arith.divf %146, %149 : vector<8x128xf32>
    %151 = arith.subf %150, %3 : vector<8x128xf32>
    %cst_62 = arith.constant 1.250000e-01 : f32
    %152 = vector.broadcast %cst_62 : f32 to vector<8x128xf32>
    %153 = arith.mulf %151, %152 : vector<8x128xf32>
    %cst_63 = arith.constant dense<0.000000e+00> : vector<128x128xf32>
    %154 = tpu.matmul %134, %153, %cst_63 {dimension_numbers = #tpu.dot_dimension_numbers<[0], [0], [1], [1], [0, 1, 1, 1], [], []>} : vector<8x128xf32>, vector<8x128xf32>, vector<128x128xf32> -> vector<128x128xf32>
    %cst_64 = arith.constant dense<0.000000e+00> : vector<128xf32>
    %155 = vector.multi_reduction <add>, %153, %cst_64 [0] : vector<8x128xf32> to vector<128xf32>
    %156 = vector.shape_cast %155 : vector<128xf32> to vector<1x128xf32>
    %cst_65 = arith.constant dense<0.000000e+00> : vector<8x128xf32>
    %157 = tpu.matmul %153, %58, %cst_65 {dimension_numbers = #tpu.dot_dimension_numbers<[1], [1], [0], [0], [0, 0, 1, 0], [], []>} : vector<8x128xf32>, vector<128x128xf32>, vector<8x128xf32> -> vector<8x128xf32>
    %cst_66 = arith.constant 0.000000e+00 : f32
    %158 = vector.broadcast %cst_66 : f32 to vector<8x128xf32>
    %159 = arith.cmpf ogt, %134, %158 : vector<8x128xf32>
    %cst_67 = arith.constant 0.000000e+00 : f32
    %160 = vector.broadcast %cst_67 : f32 to vector<8x128xf32>
    %161 = arith.select %159, %157, %160 : vector<8x128xi1>, vector<8x128xf32>
    %cst_68 = arith.constant dense<0.000000e+00> : vector<64x128xf32>
    %162 = tpu.matmul %1, %161, %cst_68 {dimension_numbers = #tpu.dot_dimension_numbers<[0], [0], [1], [1], [0, 1, 1, 1], [], []>} : vector<8x64xf32>, vector<8x128xf32>, vector<64x128xf32> -> vector<64x128xf32>
    %cst_69 = arith.constant dense<0.000000e+00> : vector<128xf32>
    %163 = vector.multi_reduction <add>, %161, %cst_69 [0] : vector<8x128xf32> to vector<128xf32>
    %164 = vector.shape_cast %163 : vector<128xf32> to vector<1x128xf32>
    %cst_70 = arith.constant 4.000000e-01 : f32
    %165 = vector.broadcast %cst_70 : f32 to vector<64x128xf32>
    %166 = arith.mulf %165, %162 : vector<64x128xf32>
    %167 = arith.subf %52, %166 : vector<64x128xf32>
    %cst_71 = arith.constant 4.000000e-01 : f32
    %168 = vector.broadcast %cst_71 : f32 to vector<1x128xf32>
    %169 = arith.mulf %168, %164 : vector<1x128xf32>
    %170 = arith.subf %55, %169 : vector<1x128xf32>
    %cst_72 = arith.constant 4.000000e-01 : f32
    %171 = vector.broadcast %cst_72 : f32 to vector<128x128xf32>
    %172 = arith.mulf %171, %154 : vector<128x128xf32>
    %173 = arith.subf %58, %172 : vector<128x128xf32>
    %cst_73 = arith.constant 4.000000e-01 : f32
    %174 = vector.broadcast %cst_73 : f32 to vector<1x128xf32>
    %175 = arith.mulf %174, %156 : vector<1x128xf32>
    %176 = arith.subf %61, %175 : vector<1x128xf32>
    %cst_74 = arith.constant dense<0.000000e+00> : vector<8x128xf32>
    %177 = tpu.matmul %5, %167, %cst_74 {dimension_numbers = #tpu.dot_dimension_numbers<[1], [0], [0], [1], [0, 0, 1, 1], [], []>} : vector<8x64xf32>, vector<64x128xf32>, vector<8x128xf32> -> vector<8x128xf32>
    %178 = vector.broadcast %170 : vector<1x128xf32> to vector<8x128xf32>
    %179 = arith.addf %177, %178 : vector<8x128xf32>
    %cst_75 = arith.constant 0.000000e+00 : f32
    %180 = vector.broadcast %cst_75 : f32 to vector<8x128xf32>
    %181 = arith.maximumf %179, %180 : vector<8x128xf32>
    %cst_76 = arith.constant dense<0.000000e+00> : vector<8x128xf32>
    %182 = tpu.matmul %181, %173, %cst_76 {dimension_numbers = #tpu.dot_dimension_numbers<[1], [0], [0], [1], [0, 0, 1, 1], [], []>} : vector<8x128xf32>, vector<128x128xf32>, vector<8x128xf32> -> vector<8x128xf32>
    %183 = vector.broadcast %176 : vector<1x128xf32> to vector<8x128xf32>
    %184 = arith.addf %182, %183 : vector<8x128xf32>
    %cst_77 = arith.constant -1.000000e+30 : f32
    %185 = vector.shape_cast %14 : vector<1x128xi1> to vector<1x128xi1>
    %186 = vector.broadcast %185 : vector<1x128xi1> to vector<8x128xi1>
    %187 = vector.broadcast %cst_77 : f32 to vector<8x128xf32>
    %188 = arith.select %186, %184, %187 : vector<8x128xi1>, vector<8x128xf32>
    %cst_78 = arith.constant dense<0xFF800000> : vector<8xf32>
    %189 = vector.multi_reduction <maximumf>, %188, %cst_78 [1] : vector<8x128xf32> to vector<8xf32>
    %190 = vector.shape_cast %189 : vector<8xf32> to vector<8x1xf32>
    %191 = vector.broadcast %190 : vector<8x1xf32> to vector<8x128xf32>
    %192 = arith.subf %188, %191 : vector<8x128xf32>
    %193 = math.exp %192 : vector<8x128xf32>
    %cst_79 = arith.constant dense<0.000000e+00> : vector<8xf32>
    %194 = vector.multi_reduction <add>, %193, %cst_79 [1] : vector<8x128xf32> to vector<8xf32>
    %195 = vector.shape_cast %194 : vector<8xf32> to vector<8x1xf32>
    %196 = math.log %195 : vector<8x1xf32>
    %197 = arith.addf %190, %196 : vector<8x1xf32>
    %198 = arith.mulf %7, %184 : vector<8x128xf32>
    %cst_80 = arith.constant dense<0.000000e+00> : vector<8xf32>
    %199 = vector.multi_reduction <add>, %198, %cst_80 [1] : vector<8x128xf32> to vector<8xf32>
    %200 = vector.shape_cast %199 : vector<8xf32> to vector<8x1xf32>
    %201 = arith.subf %197, %200 : vector<8x1xf32>
    %cst_81 = arith.constant dense<0.000000e+00> : vector<1xf32>
    %202 = vector.multi_reduction <add>, %201, %cst_81 [0] : vector<8x1xf32> to vector<1xf32>
    %203 = vector.shape_cast %202 : vector<1xf32> to vector<1x1xf32>
    %cst_82 = arith.constant 1.250000e-01 : f32
    %204 = vector.broadcast %cst_82 : f32 to vector<1x1xf32>
    %205 = arith.mulf %203, %204 : vector<1x1xf32>
    %206 = arith.cmpf oge, %200, %190 : vector<8x1xf32>
    %207 = arith.extui %206 : vector<8x1xi1> to vector<8x1xi32>
    %208 = arith.sitofp %207 : vector<8x1xi32> to vector<8x1xf32>
    %cst_83 = arith.constant dense<0.000000e+00> : vector<1xf32>
    %209 = vector.multi_reduction <add>, %208, %cst_83 [0] : vector<8x1xf32> to vector<1xf32>
    %210 = vector.shape_cast %209 : vector<1xf32> to vector<1x1xf32>
    %cst_84 = arith.constant dense<0.000000e+00> : vector<8x128xf32>
    %211 = tpu.matmul %1, %167, %cst_84 {dimension_numbers = #tpu.dot_dimension_numbers<[1], [0], [0], [1], [0, 0, 1, 1], [], []>} : vector<8x64xf32>, vector<64x128xf32>, vector<8x128xf32> -> vector<8x128xf32>
    %212 = vector.broadcast %170 : vector<1x128xf32> to vector<8x128xf32>
    %213 = arith.addf %211, %212 : vector<8x128xf32>
    %cst_85 = arith.constant 0.000000e+00 : f32
    %214 = vector.broadcast %cst_85 : f32 to vector<8x128xf32>
    %215 = arith.maximumf %213, %214 : vector<8x128xf32>
    %cst_86 = arith.constant dense<0.000000e+00> : vector<8x128xf32>
    %216 = tpu.matmul %215, %173, %cst_86 {dimension_numbers = #tpu.dot_dimension_numbers<[1], [0], [0], [1], [0, 0, 1, 1], [], []>} : vector<8x128xf32>, vector<128x128xf32>, vector<8x128xf32> -> vector<8x128xf32>
    %217 = vector.broadcast %176 : vector<1x128xf32> to vector<8x128xf32>
    %218 = arith.addf %216, %217 : vector<8x128xf32>
    %cst_87 = arith.constant -1.000000e+30 : f32
    %219 = vector.shape_cast %14 : vector<1x128xi1> to vector<1x128xi1>
    %220 = vector.broadcast %219 : vector<1x128xi1> to vector<8x128xi1>
    %221 = vector.broadcast %cst_87 : f32 to vector<8x128xf32>
    %222 = arith.select %220, %218, %221 : vector<8x128xi1>, vector<8x128xf32>
    %cst_88 = arith.constant dense<0xFF800000> : vector<8xf32>
    %223 = vector.multi_reduction <maximumf>, %222, %cst_88 [1] : vector<8x128xf32> to vector<8xf32>
    %224 = vector.shape_cast %223 : vector<8xf32> to vector<8x1xf32>
    %225 = vector.broadcast %224 : vector<8x1xf32> to vector<8x128xf32>
    %226 = arith.subf %222, %225 : vector<8x128xf32>
    %227 = math.exp %226 : vector<8x128xf32>
    %cst_89 = arith.constant dense<0.000000e+00> : vector<8xf32>
    %228 = vector.multi_reduction <add>, %227, %cst_89 [1] : vector<8x128xf32> to vector<8xf32>
    %229 = vector.shape_cast %228 : vector<8xf32> to vector<8x1xf32>
    %230 = vector.broadcast %229 : vector<8x1xf32> to vector<8x128xf32>
    %231 = arith.divf %227, %230 : vector<8x128xf32>
    %232 = arith.subf %231, %3 : vector<8x128xf32>
    %cst_90 = arith.constant 1.250000e-01 : f32
    %233 = vector.broadcast %cst_90 : f32 to vector<8x128xf32>
    %234 = arith.mulf %232, %233 : vector<8x128xf32>
    %cst_91 = arith.constant dense<0.000000e+00> : vector<128x128xf32>
    %235 = tpu.matmul %215, %234, %cst_91 {dimension_numbers = #tpu.dot_dimension_numbers<[0], [0], [1], [1], [0, 1, 1, 1], [], []>} : vector<8x128xf32>, vector<8x128xf32>, vector<128x128xf32> -> vector<128x128xf32>
    %cst_92 = arith.constant dense<0.000000e+00> : vector<128xf32>
    %236 = vector.multi_reduction <add>, %234, %cst_92 [0] : vector<8x128xf32> to vector<128xf32>
    %237 = vector.shape_cast %236 : vector<128xf32> to vector<1x128xf32>
    %cst_93 = arith.constant dense<0.000000e+00> : vector<8x128xf32>
    %238 = tpu.matmul %234, %173, %cst_93 {dimension_numbers = #tpu.dot_dimension_numbers<[1], [1], [0], [0], [0, 0, 1, 0], [], []>} : vector<8x128xf32>, vector<128x128xf32>, vector<8x128xf32> -> vector<8x128xf32>
    %cst_94 = arith.constant 0.000000e+00 : f32
    %239 = vector.broadcast %cst_94 : f32 to vector<8x128xf32>
    %240 = arith.cmpf ogt, %215, %239 : vector<8x128xf32>
    %cst_95 = arith.constant 0.000000e+00 : f32
    %241 = vector.broadcast %cst_95 : f32 to vector<8x128xf32>
    %242 = arith.select %240, %238, %241 : vector<8x128xi1>, vector<8x128xf32>
    %cst_96 = arith.constant dense<0.000000e+00> : vector<64x128xf32>
    %243 = tpu.matmul %1, %242, %cst_96 {dimension_numbers = #tpu.dot_dimension_numbers<[0], [0], [1], [1], [0, 1, 1, 1], [], []>} : vector<8x64xf32>, vector<8x128xf32>, vector<64x128xf32> -> vector<64x128xf32>
    %cst_97 = arith.constant dense<0.000000e+00> : vector<128xf32>
    %244 = vector.multi_reduction <add>, %242, %cst_97 [0] : vector<8x128xf32> to vector<128xf32>
    %245 = vector.shape_cast %244 : vector<128xf32> to vector<1x128xf32>
    %cst_98 = arith.constant 4.000000e-01 : f32
    %246 = vector.broadcast %cst_98 : f32 to vector<64x128xf32>
    %247 = arith.mulf %246, %243 : vector<64x128xf32>
    %248 = arith.subf %167, %247 : vector<64x128xf32>
    %cst_99 = arith.constant 4.000000e-01 : f32
    %249 = vector.broadcast %cst_99 : f32 to vector<1x128xf32>
    %250 = arith.mulf %249, %245 : vector<1x128xf32>
    %251 = arith.subf %170, %250 : vector<1x128xf32>
    %cst_100 = arith.constant 4.000000e-01 : f32
    %252 = vector.broadcast %cst_100 : f32 to vector<128x128xf32>
    %253 = arith.mulf %252, %235 : vector<128x128xf32>
    %254 = arith.subf %173, %253 : vector<128x128xf32>
    %cst_101 = arith.constant 4.000000e-01 : f32
    %255 = vector.broadcast %cst_101 : f32 to vector<1x128xf32>
    %256 = arith.mulf %255, %237 : vector<1x128xf32>
    %257 = arith.subf %176, %256 : vector<1x128xf32>
    %cst_102 = arith.constant dense<0.000000e+00> : vector<8x128xf32>
    %258 = tpu.matmul %5, %248, %cst_102 {dimension_numbers = #tpu.dot_dimension_numbers<[1], [0], [0], [1], [0, 0, 1, 1], [], []>} : vector<8x64xf32>, vector<64x128xf32>, vector<8x128xf32> -> vector<8x128xf32>
    %259 = vector.broadcast %251 : vector<1x128xf32> to vector<8x128xf32>
    %260 = arith.addf %258, %259 : vector<8x128xf32>
    %cst_103 = arith.constant 0.000000e+00 : f32
    %261 = vector.broadcast %cst_103 : f32 to vector<8x128xf32>
    %262 = arith.maximumf %260, %261 : vector<8x128xf32>
    %cst_104 = arith.constant dense<0.000000e+00> : vector<8x128xf32>
    %263 = tpu.matmul %262, %254, %cst_104 {dimension_numbers = #tpu.dot_dimension_numbers<[1], [0], [0], [1], [0, 0, 1, 1], [], []>} : vector<8x128xf32>, vector<128x128xf32>, vector<8x128xf32> -> vector<8x128xf32>
    %264 = vector.broadcast %257 : vector<1x128xf32> to vector<8x128xf32>
    %265 = arith.addf %263, %264 : vector<8x128xf32>
    %cst_105 = arith.constant -1.000000e+30 : f32
    %266 = vector.shape_cast %14 : vector<1x128xi1> to vector<1x128xi1>
    %267 = vector.broadcast %266 : vector<1x128xi1> to vector<8x128xi1>
    %268 = vector.broadcast %cst_105 : f32 to vector<8x128xf32>
    %269 = arith.select %267, %265, %268 : vector<8x128xi1>, vector<8x128xf32>
    %cst_106 = arith.constant dense<0xFF800000> : vector<8xf32>
    %270 = vector.multi_reduction <maximumf>, %269, %cst_106 [1] : vector<8x128xf32> to vector<8xf32>
    %271 = vector.shape_cast %270 : vector<8xf32> to vector<8x1xf32>
    %272 = vector.broadcast %271 : vector<8x1xf32> to vector<8x128xf32>
    %273 = arith.subf %269, %272 : vector<8x128xf32>
    %274 = math.exp %273 : vector<8x128xf32>
    %cst_107 = arith.constant dense<0.000000e+00> : vector<8xf32>
    %275 = vector.multi_reduction <add>, %274, %cst_107 [1] : vector<8x128xf32> to vector<8xf32>
    %276 = vector.shape_cast %275 : vector<8xf32> to vector<8x1xf32>
    %277 = math.log %276 : vector<8x1xf32>
    %278 = arith.addf %271, %277 : vector<8x1xf32>
    %279 = arith.mulf %7, %265 : vector<8x128xf32>
    %cst_108 = arith.constant dense<0.000000e+00> : vector<8xf32>
    %280 = vector.multi_reduction <add>, %279, %cst_108 [1] : vector<8x128xf32> to vector<8xf32>
    %281 = vector.shape_cast %280 : vector<8xf32> to vector<8x1xf32>
    %282 = arith.subf %278, %281 : vector<8x1xf32>
    %cst_109 = arith.constant dense<0.000000e+00> : vector<1xf32>
    %283 = vector.multi_reduction <add>, %282, %cst_109 [0] : vector<8x1xf32> to vector<1xf32>
    %284 = vector.shape_cast %283 : vector<1xf32> to vector<1x1xf32>
    %cst_110 = arith.constant 1.250000e-01 : f32
    %285 = vector.broadcast %cst_110 : f32 to vector<1x1xf32>
    %286 = arith.mulf %284, %285 : vector<1x1xf32>
    %287 = arith.cmpf oge, %281, %271 : vector<8x1xf32>
    %288 = arith.extui %287 : vector<8x1xi1> to vector<8x1xi32>
    %289 = arith.sitofp %288 : vector<8x1xi32> to vector<8x1xf32>
    %cst_111 = arith.constant dense<0.000000e+00> : vector<1xf32>
    %290 = vector.multi_reduction <add>, %289, %cst_111 [0] : vector<8x1xf32> to vector<1xf32>
    %291 = vector.shape_cast %290 : vector<1xf32> to vector<1x1xf32>
    %cst_112 = arith.constant 0.000000e+00 : f32
    %292 = vector.broadcast %cst_112 : f32 to vector<1x128xf32>
    %cst_113 = arith.constant 0.000000e+00 : f32
    %293 = vector.broadcast %cst_113 : f32 to vector<1x128xf32>
    %c0_i32 = arith.constant 0 : i32
    %294 = vector.broadcast %c0_i32 : i32 to vector<1x128xi32>
    %295 = arith.cmpi eq, %12, %294 : vector<1x128xi32>
    %296 = arith.extui %295 : vector<1x128xi1> to vector<1x128xi32>
    %297 = arith.sitofp %296 : vector<1x128xi32> to vector<1x128xf32>
    %298 = vector.broadcast %90 : vector<1x1xf32> to vector<1x128xf32>
    %299 = arith.mulf %298, %297 : vector<1x128xf32>
    %300 = arith.addf %292, %299 : vector<1x128xf32>
    %301 = vector.broadcast %95 : vector<1x1xf32> to vector<1x128xf32>
    %302 = arith.mulf %301, %297 : vector<1x128xf32>
    %303 = arith.addf %293, %302 : vector<1x128xf32>
    %c1_i32 = arith.constant 1 : i32
    %304 = vector.broadcast %c1_i32 : i32 to vector<1x128xi32>
    %305 = arith.cmpi eq, %12, %304 : vector<1x128xi32>
    %306 = arith.extui %305 : vector<1x128xi1> to vector<1x128xi32>
    %307 = arith.sitofp %306 : vector<1x128xi32> to vector<1x128xf32>
    %308 = vector.broadcast %124 : vector<1x1xf32> to vector<1x128xf32>
    %309 = arith.mulf %308, %307 : vector<1x128xf32>
    %310 = arith.addf %300, %309 : vector<1x128xf32>
    %311 = vector.broadcast %129 : vector<1x1xf32> to vector<1x128xf32>
    %312 = arith.mulf %311, %307 : vector<1x128xf32>
    %313 = arith.addf %303, %312 : vector<1x128xf32>
    %c2_i32 = arith.constant 2 : i32
    %314 = vector.broadcast %c2_i32 : i32 to vector<1x128xi32>
    %315 = arith.cmpi eq, %12, %314 : vector<1x128xi32>
    %316 = arith.extui %315 : vector<1x128xi1> to vector<1x128xi32>
    %317 = arith.sitofp %316 : vector<1x128xi32> to vector<1x128xf32>
    %318 = vector.broadcast %205 : vector<1x1xf32> to vector<1x128xf32>
    %319 = arith.mulf %318, %317 : vector<1x128xf32>
    %320 = arith.addf %310, %319 : vector<1x128xf32>
    %321 = vector.broadcast %210 : vector<1x1xf32> to vector<1x128xf32>
    %322 = arith.mulf %321, %317 : vector<1x128xf32>
    %323 = arith.addf %313, %322 : vector<1x128xf32>
    %c3_i32 = arith.constant 3 : i32
    %324 = vector.broadcast %c3_i32 : i32 to vector<1x128xi32>
    %325 = arith.cmpi eq, %12, %324 : vector<1x128xi32>
    %326 = arith.extui %325 : vector<1x128xi1> to vector<1x128xi32>
    %327 = arith.sitofp %326 : vector<1x128xi32> to vector<1x128xf32>
    %328 = vector.broadcast %286 : vector<1x1xf32> to vector<1x128xf32>
    %329 = arith.mulf %328, %327 : vector<1x128xf32>
    %330 = arith.addf %320, %329 : vector<1x128xf32>
    %331 = vector.broadcast %291 : vector<1x1xf32> to vector<1x128xf32>
    %332 = arith.mulf %331, %327 : vector<1x128xf32>
    %333 = arith.addf %323, %332 : vector<1x128xf32>
    %c0_114 = arith.constant 0 : index
    %c0_115 = arith.constant 0 : index
    %c0_116 = arith.constant 0 : index
    %334 = vector.load %arg9[%c0_114, %c0_115, %c0_116] : memref<1x1x128xf32, #tpu.memory_space<vmem>>, vector<1x1x128xf32>
    %335 = vector.shape_cast %334 : vector<1x1x128xf32> to vector<1x128xf32>
    %336 = vector.shape_cast %330 : vector<1x128xf32> to vector<1x1x128xf32>
    tpu.vector_store %arg9[%c0_114, %c0_115, %c0_116], %336 {strides = array<i32>} : memref<1x1x128xf32, #tpu.memory_space<vmem>>, vector<1x1x128xf32>,
    %c0_117 = arith.constant 0 : index
    %c0_118 = arith.constant 0 : index
    %c0_119 = arith.constant 0 : index
    %337 = vector.load %arg10[%c0_117, %c0_118, %c0_119] : memref<1x1x128xf32, #tpu.memory_space<vmem>>, vector<1x1x128xf32>
    %338 = vector.shape_cast %337 : vector<1x1x128xf32> to vector<1x128xf32>
    %339 = vector.shape_cast %333 : vector<1x128xf32> to vector<1x1x128xf32>
    tpu.vector_store %arg10[%c0_117, %c0_118, %c0_119], %339 {strides = array<i32>} : memref<1x1x128xf32, #tpu.memory_space<vmem>>, vector<1x1x128xf32>,
    return
  }
  func.func @transform_0(%arg0: i32) -> (i32, i32, i32) {
    %c0_i32 = arith.constant 0 : i32
    %c0_i32_0 = arith.constant 0 : i32
    %c0_i32_1 = arith.constant 0 : i32
    return %arg0, %c0_i32, %c0_i32_0 : i32, i32, i32
  }
  func.func @transform_1(%arg0: i32) -> (i32, i32, i32) {
    %c0_i32 = arith.constant 0 : i32
    %c0_i32_0 = arith.constant 0 : i32
    %c0_i32_1 = arith.constant 0 : i32
    return %arg0, %c0_i32, %c0_i32_0 : i32, i32, i32
  }
  func.func @transform_2(%arg0: i32) -> (i32, i32, i32) {
    %c0_i32 = arith.constant 0 : i32
    %c0_i32_0 = arith.constant 0 : i32
    %c0_i32_1 = arith.constant 0 : i32
    return %arg0, %c0_i32, %c0_i32_0 : i32, i32, i32
  }
  func.func @transform_3(%arg0: i32) -> (i32, i32, i32) {
    %c0_i32 = arith.constant 0 : i32
    %c0_i32_0 = arith.constant 0 : i32
    %c0_i32_1 = arith.constant 0 : i32
    return %arg0, %c0_i32, %c0_i32_0 : i32, i32, i32
  }
  func.func @transform_4(%arg0: i32) -> (i32, i32) {
    %c0_i32 = arith.constant 0 : i32
    %c0_i32_0 = arith.constant 0 : i32
    %c0_i32_1 = arith.constant 0 : i32
    return %c0_i32, %c0_i32_0 : i32, i32
  }
  func.func @transform_5(%arg0: i32) -> (i32, i32) {
    %c0_i32 = arith.constant 0 : i32
    %c0_i32_0 = arith.constant 0 : i32
    %c0_i32_1 = arith.constant 0 : i32
    return %c0_i32, %c0_i32_0 : i32, i32
  }
  func.func @transform_6(%arg0: i32) -> (i32, i32) {
    %c0_i32 = arith.constant 0 : i32
    %c0_i32_0 = arith.constant 0 : i32
    %c0_i32_1 = arith.constant 0 : i32
    return %c0_i32, %c0_i32_0 : i32, i32
  }
  func.func @transform_7(%arg0: i32) -> (i32, i32) {
    %c0_i32 = arith.constant 0 : i32
    %c0_i32_0 = arith.constant 0 : i32
    %c0_i32_1 = arith.constant 0 : i32
    return %c0_i32, %c0_i32_0 : i32, i32
  }
  func.func @transform_8(%arg0: i32) -> (i32, i32, i32) {
    %c0_i32 = arith.constant 0 : i32
    %c0_i32_0 = arith.constant 0 : i32
    %c0_i32_1 = arith.constant 0 : i32
    return %arg0, %c0_i32, %c0_i32_0 : i32, i32, i32
  }
  func.func @transform_9(%arg0: i32) -> (i32, i32, i32) {
    %c0_i32 = arith.constant 0 : i32
    %c0_i32_0 = arith.constant 0 : i32
    %c0_i32_1 = arith.constant 0 : i32
    return %arg0, %c0_i32, %c0_i32_0 : i32, i32, i32
  }
}

</mosaic_0001>

<bundles_post_ra>
// kernel: maml_forward.1
= control target key start
LH: loop header
LB: loop body
LE: loop exit
PB: predicated region body
PF: predicated region fallthrough
CT: control target
= control target key end

     0   :  { %s4657_s30 = smov 0   ;;  %s5761_s0 = inlined_call_operand.vmem [shape: f32[2,8,64], index: 0, kind: input, shape index: {}]   ;;  %s5762_s1 = inlined_call_operand.vmem [shape: f32[2,8,128], index: 1, kind: input, shape index: {}]   ;;  %s5763_s2 = inlined_call_operand.vmem [shape: f32[2,8,64], index: 2, kind: input, shape index: {}]   ;;  %s5764_s3 = inlined_call_operand.vmem [shape: f32[2,8,128], index: 3, kind: input, shape index: {}]   ;;  %s5765_s4 = inlined_call_operand.vmem [shape: f32[64,128], index: 4, kind: input, shape index: {}]   ;;  %s5766_s5 = inlined_call_operand.vmem [shape: f32[1,128], index: 5, kind: input, shape index: {}]   ;;  %s5767_s6 = inlined_call_operand.vmem [shape: f32[128,128], index: 6, kind: input, shape index: {}]   ;;  %s5768_s7 = inlined_call_operand.vmem [shape: f32[1,128], index: 7, kind: input, shape index: {}]   ;;  %s5769_s8 = inlined_call_operand.vmem [shape: f32[2,1,128], index: 8, kind: output, shape index: {0}]   ;;  %s5770_s9 = inlined_call_operand.vmem [shape: f32[2,1,128], index: 9, kind: output, shape index: {1}]  }
   0x1 LB: > { %s3216_s10 = sadd.s32 4294967295, %s4602_s30   ;;  %p3220_p0 = scmp.ge.s32.totalorder %s4602_s30, 1  ;;  %s4602_s30 = sphi %s4657_s30, %s20_s30  }
   0x2   : > { %p316_p1 = scmp.lt.s32.totalorder %s4602_s30, 3 }
   0x4   : > { %p317_p2 = pnand %p3220_p0, %p316_p1 }
   0x6   : > { %320 = sbr.rel (%p317_p2) target bundleno = 4674 (0x1242), region = 52 }
   0xd   : > { %v4668_v0 = vld [vmem:[%s5765_s4] sm:$0xff]  ;;  %v4673_v1 = vld [vmem:[%s5765_s4 + $0x8] sm:$0xff]  ;;  %v4678_v2 = vld [vmem:[%s5765_s4 + $0x10] sm:$0xff]  ;;  %v5773_v3 = vmov 0.0|0.0   ;;  %vm4605_vm0 = vmmov 0   ;;  %v5771_v6 = vmov 0.0   ;;  %v416_v39 = vlaneseq }
   0xe   : > { %4231 = vmatprep.subr.bf16.mxu0 %v5773_v3  ;;  %v4683_v4 = vpack.c.bf16 %v4673_v1, %v4668_v0  ;;  %v4688_v5 = vld [vmem:[%s5765_s4 + $0x18] sm:$0xff]  ;;  %3644 = vmatprep.mubr.msk.f32.mxu0 %vm4605_vm0, %v5771_v6  ;;  %p364_p3 = scmp.lt.s32.totalorder %s3216_s10, 1  ;;  %v4696_v7 = vld [vmem:[%s5767_s6] sm:$0xff]  ;;  %v4708_v9 = vld [vmem:[%s5767_s6 + $0x8] sm:$0xff]  ;;  %vm425_vm1 = vcmask 523264   ;;  %vm622_vm3 = vcmask 64512  }
   0xf   : > { %4243 = vmatprep.subr.bf16.mxu1 %v5773_v3  ;;  %3679 = vmatprep.mubr.msk.f32.mxu1 %vm4605_vm0, %v5771_v6  ;;  %v4703_v8 = vpack.c.bf16 %v4688_v5, %v4678_v2  ;;  %v4713_v10 = vld [vmem:[%s5767_s6 + $0x10] sm:$0xff]  ;;  %v4718_v11 = vld [vmem:[%s5767_s6 + $0x18] sm:$0xff]  ;;  %v4724_v12 = vld [vmem:[%s5765_s4 + $0x20] sm:$0xff]  ;;  %v4733_v14 = vpack.c.bf16 %v4708_v9, %v4696_v7  ;;  %v421_v40 = vshrl.u32 %v416_v39, 7  ;;  %v4896_v49 = vand.u32 127, %v416_v39 }
  0x10   : > { %4233 = vmatpush3.bf16.msra.mxu0 %v4683_v4  ;;  %v4729_v13 = vld [vmem:[%s5765_s4 + $0x28] sm:$0xff]  ;;  %s5835_s10 = smov (!%p364_p3, %s3216_s10), 1  ;;  %v4740_v15 = vpack.c.bf16 %v4718_v11, %v4713_v10  ;;  %v4751_v17 = vld [vmem:[%s5767_s6 + $0x20] sm:$0xff]  ;;  %v4762_v19 = vld [vmem:[%s5765_s4 + $0x30] sm:$0xff] }
  0x11   : > { %4234 = vmatprep.subr.bf16.mxu0 %v5773_v3  ;;  %4245 = vmatpush3.bf16.msra.mxu1 %v4733_v14  ;;  %v4745_v16 = vpack.c.bf16 %v4729_v13, %v4724_v12  ;;  %v4756_v18 = vld [vmem:[%s5767_s6 + $0x28] sm:$0xff]  ;;  %v4767_v20 = vld [vmem:[%s5765_s4 + $0x38] sm:$0xff]  ;;  %s4770_s20 = sshll.u32 %s5835_s10, 3  ;;  %v4786_v23 = vld [vmem:[%s5767_s6 + $0x30] sm:$0xff]  ;;  %v4874_v41 = vsub.s32 0, %v421_v40  ;;  %5800 = vst [vmem:[#allocation5_spill] sm:$0xff] %v4896_v49  ;;  %s385_s22 = scalar_lea.vmem %s5770_s9, %s5835_s10 }
  0x12   : > { %4246 = vmatprep.subr.bf16.mxu1 %v5773_v3  ;;  %v4775_v21 = vpack.c.bf16 %v4756_v18, %v4751_v17  ;;  %v4780_v22 = vpack.c.bf16 %v4767_v20, %v4762_v19  ;;  %v4791_v24 = vld [vmem:[%s5767_s6 + $0x38] sm:$0xff]  ;;  %s367_s27 = scalar_lea.vmem %s5761_s0, %s4770_s20  ;;  %v4810_v27 = vld [vmem:[%s5767_s6 + $0x40] sm:$0xff]  ;;  %v4815_v28 = vld [vmem:[%s5767_s6 + $0x48] sm:$0xff]  ;;  %vm418_vm2 = vcmp.lt.s32.totalorder %v4896_v49, 4  ;;  %s4911_s13 = scalar_lea.vmem %s5762_s1, %s4770_s20 }
  0x13   : > { %v4801_v25 = vpack.c.bf16 %v4791_v24, %v4786_v23  ;;  %v4804_v26 = vld [vmem:[%s367_s27] sm:$0xff]  ;;  %v4822_v29 = vpack.c.bf16 %v4815_v28, %v4810_v27  ;;  %v4828_v30 = vld [vmem:[%s5767_s6 + $0x50] sm:$0xff]  ;;  %v4833_v31 = vld [vmem:[%s5767_s6 + $0x58] sm:$0xff]  ;;  %5797 = vst [vmem:[#allocation2_spill] sm:$0xff] %v4874_v41  ;;  %s5034_s16 = scalar_lea.vmem %s5763_s2, %s4770_s20  ;;  %s379_s19 = scalar_lea.vmem %s5764_s3, %s4770_s20 }
  0x14   : > { %4236 = vmatpush3.bf16.msra.mxu0 %v4703_v8  ;;  %v4838_v32 = vpack.c.bf16 %v4833_v31, %v4828_v30  ;;  %v4844_v33 = vld [vmem:[%s5767_s6 + $0x60] sm:$0xff]  ;;  %v4849_v34 = vld [vmem:[%s5767_s6 + $0x68] sm:$0xff]  ;;  %v4862_v36 = vld [vmem:[%s5767_s6 + $0x70] sm:$0xff]  ;;  %s382_s25 = scalar_lea.vmem %s5769_s8, %s5835_s10 }
  0x15   : > { %4237 = vmatprep.subr.bf16.mxu0 %v5773_v3  ;;  %4248 = vmatpush3.bf16.msra.mxu1 %v4740_v15  ;;  %v4854_v35 = vpack.c.bf16 %v4849_v34, %v4844_v33  ;;  %v4867_v37 = vld [vmem:[%s5767_s6 + $0x78] sm:$0xff]  ;;  %v4879_v42 = vld [vmem:[%s5766_s5] sm:$0x1] }
  0x16   : > { %4249 = vmatprep.subr.bf16.mxu1 %v5773_v3  ;;  %v4871_v38 = vpack.c.bf16 %v4867_v37, %v4862_v36  ;;  %5798 = vst [vmem:[#allocation3_spill] sm:$0xff] %v4879_v42  ;;  %v4883_v43 = vrot.slane %v4879_v42, %v4874_v41  ;;  %v4894_v48 = vld [vmem:[%s5768_s7] sm:$0x1]  ;;  %v5810_v42 = vmov 0.0|0.0  }
  0x17   : > { %5799 = vst [vmem:[#allocation4_spill] sm:$0xff] %v4894_v48  ;;  %v4900_v50 = vrot.slane %v4894_v48, %v4874_v41 }
  0x18   : > { %4239 = vmatpush3.bf16.msra.mxu0 %v4745_v16 }
  0x19   : > { %4240 = vmatprep.subr.bf16.mxu0 %v5773_v3  ;;  %4251 = vmatpush3.bf16.msra.mxu1 %v4775_v21  ;;  %5801 = vst [vmem:[#allocation6_spill] sm:$0xff] %v4900_v50 }
  0x1a   : > { %4252 = vmatprep.subr.bf16.mxu1 %v5773_v3 }
  0x1c   : > { %4242 = vmatpush3.bf16.msra.mxu0 %v4780_v22 }
  0x1d   : > { %4254 = vmatpush3.bf16.msra.mxu1 %v4801_v25 }
  0x1e   : > { %4255 = vmatprep.subr.bf16.mxu1 %v5773_v3 }
  0x1f   : > { %3645 = vmatmul.mubr.msk.f32.vlgmr.msra.gmra.mrb[0].mxu0 %vm425_vm1, %v4804_v26 }
  0x21   : > { %4257 = vmatpush3.bf16.msra.mxu1 %v4822_v29 }
  0x22   : > { %4258 = vmatprep.subr.bf16.mxu1 %v5773_v3 }
  0x25   : > { %4260 = vmatpush3.bf16.msra.mxu1 %v4838_v32 }
  0x26   : > { %4261 = vmatprep.subr.bf16.mxu1 %v5773_v3 }
  0x29   : > { %4263 = vmatpush3.bf16.msra.mxu1 %v4854_v35 }
  0x2a   : > { %4264 = vmatprep.subr.bf16.mxu1 %v5773_v3 }
  0x2d   : > { %4266 = vmatpush3.bf16.msra.mxu1 %v4871_v38 }
  0xf2   : > { %v495_v44 = vpop.f32.mrb[0].mxu0 }
  0xf3   : > { %v496_v45 = vadd.f32 %v495_v44, %v4883_v43  ;;  %v3646_v46 = vpop.f32.mrb[1].mxu0 }
  0xf5   : > { %v4886_v47 = vmax.f32 %v496_v45, 0.0 }
  0xf7   : > { %590 = vxpose.xlu1.b32.start.end [1/1] (short) %v4886_v47, 128  ;;  %3680 = vmatmul.mubr.f32.vlgmr.msra.gmra.mrb[0].mxu1 %v4886_v47  ;;  %vm892_vm4 = vcmp.gt.f32.partialorder %v4886_v47, 0.0 }
 0x134   : > { %894 = vxpose.xlu1.b32.start.end [1/1] (short) (narrow) %v4804_v26, 64 }
 0x177   : > { %v606_v59 = vpop.trf.xlu1 }
 0x178   : > { %3684 = vmatprep.mubr.msk.f32.mxu0 %vm622_vm3, %v606_v59 }
 0x17b   : > { %v607_v60 = vpop.trf.xlu1 }
 0x17f   : > { %v608_v61 = vpop.trf.xlu1 }
 0x183   : > { %v609_v62 = vpop.trf.xlu1 }
 0x187   : > { %v610_v63 = vpop.trf.xlu1 }
 0x18b   : > { %v611_v39 = vpop.trf.xlu1 }
 0x18f   : > { %v612_v40 = vpop.trf.xlu1 }
 0x193   : > { %v613_v44 = vpop.trf.xlu1 }
 0x197   : > { %v614_v46 = vpop.trf.xlu1 }
 0x1ca   : > { %v572_v51 = vpop.f32.mrb[0].mxu1 }
 0x1cb   : > { %v573_v52 = vadd.f32 %v572_v51, %v4900_v50  ;;  %v3681_v53 = vpop.f32.mrb[1].mxu1  ;;  %v615_v51 = vpop.trf.xlu1 }
 0x1cc   : > { %v4914_v53 = vld [vmem:[%s4911_s13] sm:$0xff] }
 0x1cd   : > { %v578_v54 = vsel %vm418_vm2, %v573_v52, -1e+30  ;;  %5802 = vst [vmem:[#allocation7_spill] sm:$0xff] %v4914_v53 }
 0x1ce   : > { %579 = vmax.xlane.f32.xlu0 %v578_v54 }
 0x25b   : > { %v580_v55 = vpop.xlane.xlu0 %579 }
 0x25c   : > { %v581_v56 = vsub.f32 %v578_v54, %v580_v55 }
 0x25e   : > { %v582_v57 = vmul.f32 1.442695, %v581_v56  ;;  %v616_v56 = vpop.trf.xlu1 }
 0x260   : > { %4566 = vpow2.f32 %v582_v57 }
 0x262   : > { %v617_v59 = vpop.trf.xlu1 }
 0x26a   : > { %v4567_v58 = vpop.eup %4566 }
 0x26b   : > { %584 = vadd.xlane.f32.xlu0 %v4567_v58 }
 0x2f8   : > { %v585_v45 = vpop.xlane.xlu0 %584 }
 0x2f9   : > { %4568 = vrcp.f32 %v585_v45 }
 0x303   : > { %v4569_v52 = vpop.eup %4568 }
 0x304   : > { %v587_v54 = vmul.f32 %v4569_v52, %v4567_v58  ;;  %v618_v58 = vpop.trf.xlu1 }
 0x306   : > { %v588_v55 = vsub.f32 %v587_v54, %v4914_v53 }
 0x308   : > { %v4917_v57 = vmul.f32 0.125, %v588_v55 }
 0x30a   : > { %5803 = vst [vmem:[#allocation8_spill] sm:$0xff] %v4917_v57  ;;  %3682 = vmatprep.subr.mxu0 %v4917_v57 }
 0x30b   : > { %3683 = vmatpush3.msra.mxu0 %v4917_v57 }
 0x30c   : > { %3685 = vmatmul.mubr.msk.f32.vlgmr.msra.gmra.mrb[2].mxu0 %vm622_vm3, %v607_v60  ;;  %4267 = vmatprep.subr.bf16.mxu0 %v5773_v3  ;;  %v619_v60 = vpop.trf.xlu1 }
 0x30d   : > { %3687 = vmatprep.mubr.msk.f32.mxu0 %vm622_vm3, %v608_v61 }
 0x310   : > { %3688 = vmatmul.mubr.msk.f32.gmra.mrb[4].mxu0 %vm622_vm3, %v609_v62  ;;  %v620_v61 = vpop.trf.xlu1 }
 0x311   : > { %3690 = vmatprep.mubr.msk.f32.mxu0 %vm622_vm3, %v610_v63 }
 0x312   : > { %4269 = vmatpush3.bf16.xpose.msra.mxu0 %v4733_v14 }
 0x313   : > { %4270 = vmatprep.subr.bf16.mxu0 %v5773_v3 }
 0x314   : > { %3691 = vmatmul.mubr.msk.f32.gmra.mrb[6].mxu0 %vm622_vm3, %v611_v39  ;;  %v621_v62 = vpop.trf.xlu1 }
 0x315   : > { %3693 = vmatprep.mubr.msk.f32.mxu0 %vm622_vm3, %v612_v40 }
 0x318   : > { %3694 = vmatmul.mubr.msk.f32.gmra.mrb[8].mxu0 %vm622_vm3, %v613_v44  ;;  %v4958_v63 = vpop.trf.xlu1 }
 0x319   : > { %3696 = vmatprep.mubr.msk.f32.mxu0 %vm622_vm3, %v614_v46  ;;  %5804 = vst [vmem:[#allocation9_spill] sm:$0xff] %v4958_v63  ;;  %3745 = vmatprep.mubr.msk.f32.mxu1 %vm622_vm3, %v4958_v63 }
 0x31a   : > { %4272 = vmatpush3.bf16.xpose.msra.mxu0 %v4740_v15 }
 0x31b   : > { %4273 = vmatprep.subr.bf16.mxu0 %v5773_v3 }
 0x31c   : > { %3697 = vmatmul.mubr.msk.f32.gmra.mrb[10].mxu0 %vm622_vm3, %v615_v51 }
 0x31d   : > { %3699 = vmatprep.mubr.msk.f32.mxu0 %vm622_vm3, %v616_v56 }
 0x320   : > { %3700 = vmatmul.mubr.msk.f32.gmra.mrb[12].mxu0 %vm622_vm3, %v617_v59 }
 0x321   : > { %3702 = vmatprep.mubr.msk.f32.mxu0 %vm622_vm3, %v618_v58 }
 0x322   : > { %4275 = vmatpush3.bf16.xpose.msra.mxu0 %v4775_v21 }
 0x323   : > { %4276 = vmatprep.subr.bf16.mxu0 %v5773_v3 }
 0x324   : > { %3703 = vmatmul.mubr.msk.f32.gmra.mrb[14].mxu0 %vm622_vm3, %v619_v60 }
 0x325   : > { %3705 = vmatprep.mubr.msk.f32.mxu0 %vm622_vm3, %v620_v61 }
 0x328   : > { %3706 = vmatmul.mubr.msk.f32.gmra.mrb[16].mxu0 %vm622_vm3, %v621_v62 }
 0x329   : > { %3740 = vmatprep.mubr.msk.f32.mxu0 %vm4605_vm0, %v5771_v6 }
 0x32a   : > { %4278 = vmatpush3.bf16.xpose.msra.mxu0 %v4801_v25 }
 0x32b   : > { %4279 = vmatprep.subr.bf16.mxu0 %v5773_v3 }
 0x332   : > { %4281 = vmatpush3.bf16.xpose.msra.mxu0 %v4822_v29 }
 0x333   : > { %4282 = vmatprep.subr.bf16.mxu0 %v5773_v3 }
 0x33a   : > { %4284 = vmatpush3.bf16.xpose.msra.mxu0 %v4838_v32 }
 0x33b   : > { %4285 = vmatprep.subr.bf16.mxu0 %v5773_v3 }
 0x342   : > { %4287 = vmatpush3.bf16.xpose.msra.mxu0 %v4854_v35 }
 0x343   : > { %4288 = vmatprep.subr.bf16.mxu0 %v5773_v3 }
 0x34a   : > { %4290 = vmatpush3.bf16.xpose.msra.mxu0 %v4871_v38 }
 0x34b   : > { %4327 = vmatprep.subr.bf16.mxu0 %v5773_v3  ;;  %v4994_v3 = vpop.trf.xlu1 }
 0x34c   : > { %5805 = vst [vmem:[#allocation10_spill] sm:$0xff] %v4994_v3 }
 0x34f   : > { %v4996_v50 = vpop.trf.xlu1 }
 0x350   : > { %5806 = vst [vmem:[#allocation11_spill] sm:$0xff] %v4996_v50 }
 0x351   : > { %3741 = vmatmul.mubr.f32.vlgmr.msra.gmra.mrb[18].mxu0 %v4917_v57 }
 0x352   : > { %3827 = vmatprep.mubr.msk.f32.mxu0 %vm4605_vm0, %v5771_v6 }
 0x353   : > { %v4998_v63 = vpop.trf.xlu1 }
 0x354   : > { %5807 = vst [vmem:[#allocation12_spill] sm:$0xff] %v4998_v63 }
 0x357   : > { %v5000_v53 = vpop.trf.xlu1 }
 0x358   : > { %5808 = vst [vmem:[#allocation13_spill] sm:$0xff] %v5000_v53 }
 0x35b   : > { %v5003_v48 = vpop.trf.xlu1 }
 0x35c   : > { %5809 = vst [vmem:[#allocation14_spill] sm:$0xff] %v5003_v48 }
 0x35f   : > { %v5014_v47 = vpop.trf.xlu1 }
 0x360   : > { %5811 = vst [vmem:[#allocation15_spill] sm:$0xff] %v5014_v47 }
 0x3df   : > { %v4962_v39 = vpop.f32.mrb[2].mxu0 }
 0x3e0   : > { %v4964_v40 = vpop.f32.mrb[3].mxu0 }
 0x3e3   : > { %v4966_v44 = vpop.f32.mrb[4].mxu0 }
 0x3e4   : > { %v4968_v45 = vpop.f32.mrb[5].mxu0 }
 0x3e7   : > { %v4970_v46 = vpop.f32.mrb[6].mxu0 }
 0x3e8   : > { %v4972_v51 = vpop.f32.mrb[7].mxu0 }
 0x3eb   : > { %v4974_v52 = vpop.f32.mrb[8].mxu0 }
 0x3ec   : > { %v4976_v54 = vpop.f32.mrb[9].mxu0 }
 0x3ef   : > { %v4978_v55 = vpop.f32.mrb[10].mxu0 }
 0x3f0   : > { %v4980_v56 = vpop.f32.mrb[11].mxu0 }
 0x3f3   : > { %v4982_v59 = vpop.f32.mrb[12].mxu0 }
 0x3f4   : > { %v4984_v58 = vpop.f32.mrb[13].mxu0 }
 0x3f7   : > { %v4986_v60 = vpop.f32.mrb[14].mxu0 }
 0x3f8   : > { %v4988_v61 = vpop.f32.mrb[15].mxu0 }
 0x3fb   : > { %v4990_v62 = vpop.f32.mrb[16].mxu0 }
 0x3fc   : > { %v4992_v6 = vpop.f32.mrb[17].mxu0 }
 0x424   : > { %v888_v49 = vpop.f32.mrb[18].mxu0 }
 0x425   : > { %v5005_v57 = vsel %vm892_vm4, %v888_v49, 0.0  ;;  %v3742_v41 = vpop.f32.mrb[19].mxu0  ;;  %3743 = vmatprep.subr.msk.mxu1 %vm892_vm4, %v888_v49 }
 0x426   : > { %3744 = vmatpush3.msk.msra.mxu1 %vm892_vm4, %v888_v49  ;;  %v5042_v41 = vld [vmem:[%s5034_s16] sm:$0xff] }
 0x427   : > { %3746 = vmatmul.mubr.msk.f32.vlgmr.msra.gmra.mrb[2].mxu1 %vm622_vm3, %v4994_v3  ;;  %4291 = vmatprep.subr.bf16.mxu1 %v5810_v42 }
 0x428   : > { %3748 = vmatprep.mubr.msk.f32.mxu1 %vm622_vm3, %v4996_v50  ;;  %4293 = vmatpush3.bf16.msra.mxu1 %v4683_v4  ;;  %v5027_v4 = vpop.trf.xlu1 }
 0x429   : > { %4294 = vmatprep.subr.bf16.mxu1 %v5810_v42  ;;  %5812 = vst [vmem:[#allocation16_spill] sm:$0xff] %v5027_v4 }
 0x42b   : > { %3749 = vmatmul.mubr.msk.f32.gmra.mrb[4].mxu1 %vm622_vm3, %v4998_v63 }
 0x42c   : > { %3751 = vmatprep.mubr.msk.f32.mxu1 %vm622_vm3, %v5000_v53  ;;  %4296 = vmatpush3.bf16.msra.mxu1 %v4703_v8  ;;  %v5813_v8 = vmov 0.0  }
 0x42d   : > { %4297 = vmatprep.subr.bf16.mxu1 %v5810_v42 }
 0x42f   : > { %3752 = vmatmul.mubr.msk.f32.gmra.mrb[6].mxu1 %vm622_vm3, %v5003_v48 }
 0x430   : > { %3754 = vmatprep.mubr.msk.f32.mxu1 %vm622_vm3, %v5014_v47  ;;  %4299 = vmatpush3.bf16.msra.mxu1 %v4745_v16 }
 0x431   : > { %4300 = vmatprep.subr.bf16.mxu1 %v5810_v42 }
 0x433   : > { %3755 = vmatmul.mubr.msk.f32.gmra.mrb[8].mxu1 %vm622_vm3, %v5027_v4 }
 0x434   : > { %4302 = vmatpush3.bf16.msra.mxu1 %v4780_v22  ;;  %3773 = vmatprep.mubr.msk.f32.mxu1 %vm4605_vm0, %v5813_v8 }
 0x435   : > { %4303 = vmatprep.subr.bf16.mxu1 %v5810_v42 }
 0x437   : > { %3774 = vmatmul.mubr.msk.f32.vlgmr.msra.gmra.mrb[10].mxu1 %vm425_vm1, %v5042_v41 }
 0x438   : > { %4305 = vmatpush3.bf16.msra.mxu1 %v4733_v14  ;;  %3808 = vmatprep.mubr.msk.f32.mxu1 %vm4605_vm0, %v5813_v8 }
 0x439   : > { %4306 = vmatprep.subr.bf16.mxu1 %v5810_v42 }
 0x43c   : > { %4308 = vmatpush3.bf16.msra.mxu1 %v4740_v15 }
 0x43d   : > { %4309 = vmatprep.subr.bf16.mxu1 %v5810_v42 }
 0x440   : > { %4311 = vmatpush3.bf16.msra.mxu1 %v4775_v21 }
 0x441   : > { %4312 = vmatprep.subr.bf16.mxu1 %v5810_v42 }
 0x444   : > { %4314 = vmatpush3.bf16.msra.mxu1 %v4801_v25 }
 0x445   : > { %4315 = vmatprep.subr.bf16.mxu1 %v5810_v42 }
 0x448   : > { %4317 = vmatpush3.bf16.msra.mxu1 %v4822_v29 }
 0x449   : > { %4318 = vmatprep.subr.bf16.mxu1 %v5810_v42 }
 0x44c   : > { %4320 = vmatpush3.bf16.msra.mxu1 %v4838_v32 }
 0x44d   : > { %4321 = vmatprep.subr.bf16.mxu1 %v5810_v42 }
 0x450   : > { %4323 = vmatpush3.bf16.msra.mxu1 %v4854_v35 }
 0x451   : > { %4324 = vmatprep.subr.bf16.mxu1 %v5810_v42 }
 0x454   : > { %4326 = vmatpush3.bf16.msra.mxu1 %v4871_v38 }
 0x455   : > { %4339 = vmatprep.subr.bf16.mxu1 %v5810_v42 }
 0x4fa   : > { %v3747_v14 = vpop.f32.mrb[2].mxu1 }
 0x4fb   : > { %v1062_v15 = vmul.f32 0.4, %v3747_v14  ;;  %v1016_v16 = vpop.f32.mrb[3].mxu1 }
 0x4fc   : > { %v1061_v21 = vmul.f32 0.4, %v1016_v16 }
 0x4fd   : > { %v5066_v22 = vsub.f32 %v4673_v1, %v1062_v15 }
 0x4fe   : > { %v5069_v25 = vsub.f32 %v4668_v0, %v1061_v21  ;;  %v3750_v29 = vpop.f32.mrb[4].mxu1 }
 0x4ff   : > { %v1064_v32 = vmul.f32 0.4, %v3750_v29  ;;  %v1026_v49 = vpop.f32.mrb[5].mxu1  ;;  %v1080_v29 = vmul.f32 0.4, %v4962_v39 }
 0x500   : > { %v4328_v35 = vpack.c.bf16 %v5066_v22, %v5069_v25  ;;  %v1063_v4 = vmul.f32 0.4, %v1026_v49 }
 0x501   : > { %v5074_v38 = vsub.f32 %v4688_v5, %v1064_v32  ;;  %v1079_v5 = vmul.f32 0.4, %v4964_v40  ;;  %v5094_v39 = vsub.f32 %v4708_v9, %v1080_v29  ;;  %v1083_v29 = vmul.f32 0.4, %v4972_v51 }
 0x502   : > { %v5077_v14 = vsub.f32 %v4678_v2, %v1063_v4  ;;  %v3753_v16 = vpop.f32.mrb[6].mxu1  ;;  %4329 = vmatpush3.bf16.msra.mxu0 %v4328_v35 }
 0x503   : > { %v1066_v1 = vmul.f32 0.4, %v3753_v16  ;;  %v1036_v15 = vpop.f32.mrb[7].mxu1  ;;  %4330 = vmatprep.subr.bf16.mxu0 %v5810_v42  ;;  %v5100_v40 = vsub.f32 %v4696_v7, %v1079_v5  ;;  %v1084_v7 = vmul.f32 0.4, %v4970_v46  ;;  %v5131_v51 = vsub.f32 %v4751_v17, %v1083_v29  ;;  %v5816_v29 = vld [vmem:[#allocation2_spill] sm:$0xff] }
 0x504   : > { %5814 = vst [vmem:[#allocation17_spill] sm:$0xff] %v5077_v14  ;;  %v4331_v0 = vpack.c.bf16 %v5074_v38, %v5077_v14  ;;  %v1065_v21 = vmul.f32 0.4, %v1036_v15  ;;  %v1085_v5 = vmul.f32 0.4, %v4976_v54 }
 0x505   : > { %v5084_v49 = vsub.f32 %v4729_v13, %v1066_v1  ;;  %v1081_v1 = vmul.f32 0.4, %v4968_v45  ;;  %v5115_v45 = vpack.c.bf16 %v5094_v39, %v5100_v40  ;;  %v5128_v46 = vsub.f32 %v4756_v18, %v1084_v7 }
 0x506   : > { %v5088_v2 = vsub.f32 %v4724_v12, %v1065_v21  ;;  %v3756_v4 = vpop.f32.mrb[8].mxu1  ;;  %4332 = vmatpush3.bf16.msra.mxu0 %v4331_v0  ;;  %v1082_v12 = vmul.f32 0.4, %v4966_v44  ;;  %v1088_v54 = vmul.f32 0.4, %v4978_v55 }
 0x507   : > { %v1068_v32 = vmul.f32 0.4, %v3756_v4  ;;  %v1046_v16 = vpop.f32.mrb[9].mxu1  ;;  %4333 = vmatprep.subr.bf16.mxu0 %v5810_v42  ;;  %v5148_v17 = vpack.c.bf16 %v5128_v46, %v5131_v51 }
 0x508   : > { %v4334_v14 = vpack.c.bf16 %v5084_v49, %v5088_v2  ;;  %v1067_v15 = vmul.f32 0.4, %v1046_v16 }
 0x509   : > { %v5097_v13 = vsub.f32 %v4767_v20, %v1068_v32  ;;  %v1090_v32 = vmul.f32 0.4, %v4982_v59 }
 0x50a   : > { %v5105_v21 = vsub.f32 %v4762_v19, %v1067_v15  ;;  %v1182_v4 = vpop.f32.mrb[10].mxu1  ;;  %4335 = vmatpush3.bf16.msra.mxu0 %v4334_v14  ;;  %v5118_v19 = vsub.f32 %v4718_v11, %v1082_v12  ;;  %v1086_v11 = vmul.f32 0.4, %v4974_v52  ;;  %v5155_v52 = vsub.f32 %v4786_v23, %v1085_v5 }
 0x50b   : > { %v1183_v16 = vadd.f32 %v1182_v4, %v4883_v43  ;;  %4336 = vmatprep.subr.bf16.mxu0 %v5810_v42  ;;  %v3775_v9 = vpop.f32.mrb[11].mxu1  ;;  %v5121_v43 = vsub.f32 %v4713_v10, %v1081_v1  ;;  %v1089_v15 = vmul.f32 0.4, %v4984_v58  ;;  %v5169_v23 = vsub.f32 %v4815_v28, %v1088_v54 }
 0x50c   : > { %v4337_v20 = vpack.c.bf16 %v5097_v13, %v5105_v21  ;;  %v5152_v18 = vsub.f32 %v4791_v24, %v1086_v11  ;;  %v1091_v58 = vmul.f32 0.4, %v4988_v61  ;;  %v1094_v61 = vmul.f32 0.4, %v4990_v62  ;;  %v5815_v9 = vld [vmem:[#allocation3_spill] sm:$0xff] }
 0x50d   : > { %v1186_v44 = vmax.f32 %v1183_v16, 0.0  ;;  %v5138_v10 = vpack.c.bf16 %v5118_v19, %v5121_v43  ;;  %v5180_v59 = vsub.f32 %v4828_v30, %v1089_v15 }
 0x50e   : > { %4338 = vmatpush3.bf16.msra.mxu0 %v4337_v20  ;;  %v5166_v24 = vpack.c.bf16 %v5152_v18, %v5155_v52 }
 0x50f   : > { %3809 = vmatmul.mubr.f32.vlgmr.msra.gmra.mrb[12].mxu1 %v1186_v44  ;;  %4363 = vmatprep.subr.bf16.mxu0 %v5810_v42 }
 0x510   : > { %4341 = vmatpush3.bf16.msra.mxu1 %v5115_v45  ;;  %3862 = vmatprep.mubr.msk.f32.mxu1 %vm4605_vm0, %v5813_v8 }
 0x511   : > { %3828 = vmatmul.mubr.msk.f32.vlgmr.msra.gmra.mrb[20].mxu0 %vm425_vm1, %v5042_v41  ;;  %4342 = vmatprep.subr.bf16.mxu1 %v5810_v42 }
 0x512   : > { %4365 = vmatpush3.bf16.msra.mxu0 %v4328_v35  ;;  %3881 = vmatprep.mubr.msk.f32.mxu0 %vm4605_vm0, %v5813_v8  ;;  %v1087_v35 = vmul.f32 0.4, %v4980_v56  ;;  %v5177_v56 = vsub.f32 %v4833_v31, %v1090_v32 }
 0x513   : > { %4366 = vmatprep.subr.bf16.mxu0 %v5810_v42 }
 0x514   : > { %4344 = vmatpush3.bf16.msra.mxu1 %v5138_v10  ;;  %v5172_v55 = vsub.f32 %v4810_v27, %v1087_v35  ;;  %v1092_v27 = vmul.f32 0.4, %v4986_v60  ;;  %v5193_v31 = vpack.c.bf16 %v5177_v56, %v5180_v59  ;;  %v5202_v60 = vsub.f32 %v4844_v33, %v1091_v58 }
 0x515   : > { %4345 = vmatprep.subr.bf16.mxu1 %v5810_v42  ;;  %v5217_v33 = vsub.f32 %v4867_v37, %v1094_v61  ;;  %v5817_v61 = vld [vmem:[#allocation8_spill] sm:$0xff] }
 0x516   : > { %4368 = vmatpush3.bf16.msra.mxu0 %v4331_v0  ;;  %v5185_v28 = vpack.c.bf16 %v5169_v23, %v5172_v55  ;;  %v5199_v30 = vsub.f32 %v4849_v34, %v1092_v27 }
 0x517   : > { %4369 = vmatprep.subr.bf16.mxu0 %v5810_v42 }
 0x518   : > { %4347 = vmatpush3.bf16.msra.mxu1 %v5148_v17  ;;  %v5214_v34 = vpack.c.bf16 %v5199_v30, %v5202_v60 }
 0x519   : > { %4348 = vmatprep.subr.bf16.mxu1 %v5810_v42 }
 0x51a   : > { %4371 = vmatpush3.bf16.msra.mxu0 %v4334_v14  ;;  %v1093_v14 = vmul.f32 0.4, %v4992_v6 }
 0x51b   : > { %4372 = vmatprep.subr.bf16.mxu0 %v5810_v42 }
 0x51c   : > { %4350 = vmatpush3.bf16.msra.mxu1 %v5166_v24  ;;  %v5220_v6 = vsub.f32 %v4862_v36, %v1093_v14  ;;  %v1055_v36 = vrot.slane %v5005_v57, 4  ;;  %v816_v14 = vrot.slane %v5817_v61, 4 }
 0x51d   : > { %4351 = vmatprep.subr.bf16.mxu1 %v5810_v42 }
 0x51e   : > { %4374 = vmatpush3.bf16.msra.mxu0 %v4337_v20  ;;  %v5228_v62 = vpack.c.bf16 %v5217_v33, %v5220_v6  ;;  %v1056_v37 = vadd.f32 %v1055_v36, %v5005_v57  ;;  %v817_v36 = vadd.f32 %v816_v14, %v5817_v61 }
 0x51f   : > { %4375 = vmatprep.subr.bf16.mxu0 %v5810_v42 }
 0x520   : > { %4353 = vmatpush3.bf16.msra.mxu1 %v5185_v28  ;;  %v1057_v0 = vrot.slane %v1056_v37, 2 }
 0x521   : > { %3882 = vmatmul.mubr.msk.f32.vlgmr.msra.gmra.mrb[22].mxu0 %vm425_vm1, %v4804_v26  ;;  %4354 = vmatprep.subr.bf16.mxu1 %v5810_v42 }
 0x522   : > { %4377 = vmatpush3.bf16.msra.mxu0 %v5115_v45  ;;  %3916 = vmatprep.mubr.msk.f32.mxu0 %vm4605_vm0, %v5813_v8  ;;  %v1058_v12 = vadd.f32 %v1057_v0, %v1056_v37  ;;  %v818_v37 = vrot.slane %v817_v36, 2 }
 0x523   : > { %4378 = vmatprep.subr.bf16.mxu0 %v5810_v42 }
 0x524   : > { %4356 = vmatpush3.bf16.msra.mxu1 %v5193_v31  ;;  %v1059_v1 = vrot.slane %v1058_v12, 1  ;;  %v819_v0 = vadd.f32 %v818_v37, %v817_v36 }
 0x525   : > { %4357 = vmatprep.subr.bf16.mxu1 %v5810_v42 }
 0x526   : > { %4380 = vmatpush3.bf16.msra.mxu0 %v5138_v10  ;;  %v1060_v4 = vadd.f32 %v1059_v1, %v1058_v12  ;;  %v820_v12 = vrot.slane %v819_v0, 1 }
 0x527   : > { %4381 = vmatprep.subr.bf16.mxu0 %v5810_v42 }
 0x528   : > { %4359 = vmatpush3.bf16.msra.mxu1 %v5214_v34  ;;  %v1077_v16 = vmul.f32 0.4, %v1060_v4  ;;  %v821_v1 = vadd.f32 %v820_v12, %v819_v0 }
 0x529   : > { %4360 = vmatprep.subr.bf16.mxu1 %v5810_v42 }
 0x52a   : > { %4383 = vmatpush3.bf16.msra.mxu0 %v5148_v17  ;;  %v5246_v20 = vsub.f32 %v5815_v9, %v1077_v16  ;;  %v1111_v4 = vmul.f32 0.4, %v821_v1  ;;  %v5818_v16 = vld [vmem:[#allocation4_spill] sm:$0xff] }
 0x52b   : > { %4384 = vmatprep.subr.bf16.mxu0 %v5810_v42 }
 0x52c   : > { %4362 = vmatpush3.bf16.msra.mxu1 %v5228_v62  ;;  %v1292_v44 = vrot.slane %v5246_v20, %v5816_v29  ;;  %v5260_v9 = vsub.f32 %v5818_v16, %v1111_v4  ;;  %v5821_v4 = vld [vmem:[#allocation7_spill] sm:$0xff] }
 0x52e   : > { %4386 = vmatpush3.bf16.msra.mxu0 %v5166_v24 }
 0x52f   : > { %4387 = vmatprep.subr.bf16.mxu0 %v5810_v42 }
 0x532   : > { %4389 = vmatpush3.bf16.msra.mxu0 %v5185_v28 }
 0x533   : > { %4390 = vmatprep.subr.bf16.mxu0 %v5810_v42 }
 0x536   : > { %4392 = vmatpush3.bf16.msra.mxu0 %v5193_v31 }
 0x537   : > { %4393 = vmatprep.subr.bf16.mxu0 %v5810_v42 }
 0x53a   : > { %4395 = vmatpush3.bf16.msra.mxu0 %v5214_v34 }
 0x53b   : > { %4396 = vmatprep.subr.bf16.mxu0 %v5810_v42 }
 0x53e   : > { %4398 = vmatpush3.bf16.msra.mxu0 %v5228_v62 }
 0x53f   : > { %4423 = vmatprep.subr.bf16.mxu0 %v5810_v42 }
 0x5e2   : > { %v5248_v7 = vpop.f32.mrb[12].mxu1 }
 0x5e3   : > { %v3810_v11 = vpop.f32.mrb[13].mxu1 }
 0x5e4   : > { %v1360_v5 = vpop.f32.mrb[20].mxu0 }
 0x5e5   : > { %v1361_v54 = vadd.f32 %v1360_v5, %v1292_v44  ;;  %v3829_v35 = vpop.f32.mrb[21].mxu0 }
 0x5e7   : > { %v1364_v32 = vmax.f32 %v1361_v54, 0.0 }
 0x5e9   : > { %3863 = vmatmul.mubr.f32.vlgmr.msra.gmra.mrb[14].mxu1 %v1364_v32 }
 0x5f4   : > { %v1538_v57 = vpop.f32.mrb[22].mxu0 }
 0x5f5   : > { %v1539_v15 = vadd.f32 %v1538_v57, %v1292_v44  ;;  %v3883_v27 = vpop.f32.mrb[23].mxu0  ;;  %v1369_v44 = vrot.slane %v5260_v9, %v5816_v29 }
 0x5f7   : > { %v5252_v58 = vmax.f32 %v1539_v15, 0.0  ;;  %v5820_v15 = vld [vmem:[#allocation5_spill] sm:$0xff] }
 0x5f8   : > { %vm3085_vm11 = vcmp.eq.s32.totalorder %v5820_v15, 1  ;;  %vm3078_vm12 = vcmp.eq.s32.totalorder %v5820_v15, 0  ;;  %vm3092_vm13 = vcmp.eq.s32.totalorder %v5820_v15, 2  ;;  %vm3099_vm14 = vcmp.eq.s32.totalorder %v5820_v15, 3 }
 0x5f9   : > { %3917 = vmatmul.mubr.f32.vlgmr.msra.gmra.mrb[24].mxu0 %v5252_v58  ;;  %vm1926_vm5 = vcmp.gt.f32.partialorder %v5252_v58, 0.0 }
 0x5fa   : > { %4010 = vmatprep.mubr.msk.f32.mxu0 %vm4605_vm0, %v5813_v8 }
 0x6bc   : > { %v1437_v11 = vpop.f32.mrb[14].mxu1 }
 0x6bd   : > { %v5264_v5 = vadd.f32 %v1437_v11, %v1369_v44  ;;  %v3864_v54 = vpop.f32.mrb[15].mxu1 }
 0x6bf   : > { %5819 = vst [vmem:[#allocation3_spill] sm:$0xff] %v5264_v5  ;;  %v5824_v5 = vld [vmem:[#allocation17_spill] sm:$0xff] }
 0x6cc   : > { %v1609_v35 = vpop.f32.mrb[24].mxu0 }
 0x6cd   : > { %v1610_v32 = vadd.f32 %v1609_v35, %v1369_v44  ;;  %v3918_v57 = vpop.f32.mrb[25].mxu0 }
 0x6cf   : > { %v1613_v27 = vsel %vm418_vm2, %v1610_v32, -1e+30 }
 0x6d0   : > { %1614 = vmax.xlane.f32.xlu0 %v1613_v27 }
 0x75d   : > { %v1615_v61 = vpop.xlane.xlu0 %1614 }
 0x75e   : > { %v1616_v14 = vsub.f32 %v1613_v27, %v1615_v61 }
 0x760   : > { %v1617_v36 = vmul.f32 1.442695, %v1616_v14 }
 0x762   : > { %4570 = vpow2.f32 %v1617_v36 }
 0x76c   : > { %v4571_v37 = vpop.eup %4570 }
 0x76d   : > { %1619 = vadd.xlane.f32.xlu0 %v4571_v37 }
 0x79a   : > { %1625 = vxpose.xlu0.b32.start.end [1/1] (short) %v5252_v58, 128  ;;  %v5823_v58 = vld [vmem:[#allocation16_spill] sm:$0xff] }
 0x7fa   : > { %v1620_v0 = vpop.xlane.xlu0 %1619 }
 0x7fb   : > { %4572 = vrcp.f32 %v1620_v0 }
 0x805   : > { %v4573_v12 = vpop.eup %4572 }
 0x806   : > { %v1622_v1 = vmul.f32 %v4573_v12, %v4571_v37 }
 0x808   : > { %v1623_v16 = vsub.f32 %v1622_v1, %v5821_v4 }
 0x80a   : > { %v5270_v44 = vmul.f32 0.125, %v1623_v16 }
 0x80c   : > { %3919 = vmatprep.subr.mxu1 %v5270_v44 }
 0x80d   : > { %3920 = vmatpush3.msra.mxu1 %v5270_v44 }
 0x80e   : > { %4399 = vmatprep.subr.bf16.mxu1 %v5810_v42 }
 0x81a   : > { %v1641_v11 = vpop.trf.xlu0 }
 0x81b   : > { %3921 = vmatprep.mubr.msk.f32.mxu1 %vm622_vm3, %v1641_v11 }
 0x81e   : > { %v1642_v54 = vpop.trf.xlu0 }
 0x81f   : > { %3922 = vmatmul.mubr.msk.f32.vlgmr.msra.gmra.mrb[16].mxu1 %vm622_vm3, %v1642_v54 }
 0x820   : > { %4401 = vmatpush3.bf16.xpose.msra.mxu1 %v5115_v45 }
 0x821   : > { %4402 = vmatprep.subr.bf16.mxu1 %v5810_v42 }
 0x822   : > { %v1643_v35 = vpop.trf.xlu0 }
 0x823   : > { %3924 = vmatprep.mubr.msk.f32.mxu1 %vm622_vm3, %v1643_v35 }
 0x826   : > { %v1644_v32 = vpop.trf.xlu0 }
 0x827   : > { %3925 = vmatmul.mubr.msk.f32.gmra.mrb[18].mxu1 %vm622_vm3, %v1644_v32 }
 0x828   : > { %4404 = vmatpush3.bf16.xpose.msra.mxu1 %v5138_v10 }
 0x829   : > { %4405 = vmatprep.subr.bf16.mxu1 %v5810_v42 }
 0x82a   : > { %v1645_v57 = vpop.trf.xlu0 }
 0x82b   : > { %3927 = vmatprep.mubr.msk.f32.mxu1 %vm622_vm3, %v1645_v57 }
 0x82e   : > { %v1646_v27 = vpop.trf.xlu0 }
 0x82f   : > { %3928 = vmatmul.mubr.msk.f32.gmra.mrb[20].mxu1 %vm622_vm3, %v1646_v27 }
 0x830   : > { %4407 = vmatpush3.bf16.xpose.msra.mxu1 %v5148_v17 }
 0x831   : > { %4408 = vmatprep.subr.bf16.mxu1 %v5810_v42 }
 0x832   : > { %v1647_v45 = vpop.trf.xlu0 }
 0x833   : > { %3930 = vmatprep.mubr.msk.f32.mxu1 %vm622_vm3, %v1647_v45 }
 0x836   : > { %v1648_v61 = vpop.trf.xlu0 }
 0x837   : > { %3931 = vmatmul.mubr.msk.f32.gmra.mrb[22].mxu1 %vm622_vm3, %v1648_v61 }
 0x838   : > { %4410 = vmatpush3.bf16.xpose.msra.mxu1 %v5166_v24 }
 0x839   : > { %4411 = vmatprep.subr.bf16.mxu1 %v5810_v42 }
 0x83a   : > { %v1649_v10 = vpop.trf.xlu0 }
 0x83b   : > { %3933 = vmatprep.mubr.msk.f32.mxu1 %vm622_vm3, %v1649_v10 }
 0x83e   : > { %v1650_v14 = vpop.trf.xlu0 }
 0x83f   : > { %3934 = vmatmul.mubr.msk.f32.gmra.mrb[24].mxu1 %vm622_vm3, %v1650_v14 }
 0x840   : > { %4413 = vmatpush3.bf16.xpose.msra.mxu1 %v5185_v28 }
 0x841   : > { %4414 = vmatprep.subr.bf16.mxu1 %v5810_v42 }
 0x842   : > { %v1651_v17 = vpop.trf.xlu0 }
 0x843   : > { %3936 = vmatprep.mubr.msk.f32.mxu1 %vm622_vm3, %v1651_v17 }
 0x846   : > { %v1652_v36 = vpop.trf.xlu0 }
 0x847   : > { %3937 = vmatmul.mubr.msk.f32.gmra.mrb[26].mxu1 %vm622_vm3, %v1652_v36 }
 0x848   : > { %4416 = vmatpush3.bf16.xpose.msra.mxu1 %v5193_v31  ;;  %v5822_v31 = vld [vmem:[#allocation9_spill] sm:$0xff] }
 0x849   : > { %4417 = vmatprep.subr.bf16.mxu1 %v5810_v42 }
 0x84a   : > { %v1653_v24 = vpop.trf.xlu0 }
 0x84b   : > { %3939 = vmatprep.mubr.msk.f32.mxu1 %vm622_vm3, %v1653_v24 }
 0x84e   : > { %v1654_v37 = vpop.trf.xlu0 }
 0x84f   : > { %3940 = vmatmul.mubr.msk.f32.gmra.mrb[28].mxu1 %vm622_vm3, %v1654_v37 }
 0x850   : > { %4419 = vmatpush3.bf16.xpose.msra.mxu1 %v5214_v34 }
 0x851   : > { %4420 = vmatprep.subr.bf16.mxu1 %v5810_v42 }
 0x852   : > { %v1655_v28 = vpop.trf.xlu0 }
 0x853   : > { %3942 = vmatprep.mubr.msk.f32.mxu1 %vm622_vm3, %v1655_v28 }
 0x856   : > { %v1656_v0 = vpop.trf.xlu0 }
 0x857   : > { %3943 = vmatmul.mubr.msk.f32.gmra.mrb[30].mxu1 %vm622_vm3, %v1656_v0 }
 0x858   : > { %4422 = vmatpush3.bf16.xpose.msra.mxu1 %v5228_v62  ;;  %3977 = vmatprep.mubr.msk.f32.mxu1 %vm4605_vm0, %v5813_v8 }
 0x85f   : > { %3978 = vmatmul.mubr.f32.vlgmr.msra.gmra.mrb[32].mxu1 %v5270_v44 }
 0x860   : > { %3982 = vmatprep.mubr.msk.f32.mxu1 %vm622_vm3, %v5822_v31 }
 0x8f2   : > { %v3923_v12 = vpop.f32.mrb[16].mxu1 }
 0x8f3   : > { %v1771_v34 = vpop.f32.mrb[17].mxu1 }
 0x8fa   : > { %v5311_v1 = vpop.f32.mrb[18].mxu1 }
 0x8fb   : > { %v5313_v4 = vpop.f32.mrb[19].mxu1 }
 0x902   : > { %v5315_v16 = vpop.f32.mrb[20].mxu1 }
 0x903   : > { %v5317_v11 = vpop.f32.mrb[21].mxu1 }
 0x90a   : > { %v5319_v54 = vpop.f32.mrb[22].mxu1 }
 0x90b   : > { %v5321_v62 = vpop.f32.mrb[23].mxu1 }
 0x912   : > { %v5323_v35 = vpop.f32.mrb[24].mxu1 }
 0x913   : > { %v5325_v32 = vpop.f32.mrb[25].mxu1 }
 0x91a   : > { %v5327_v57 = vpop.f32.mrb[26].mxu1 }
 0x91b   : > { %v5329_v27 = vpop.f32.mrb[27].mxu1 }
 0x922   : > { %v5331_v45 = vpop.f32.mrb[28].mxu1 }
 0x923   : > { %v5333_v61 = vpop.f32.mrb[29].mxu1 }
 0x92a   : > { %v5335_v10 = vpop.f32.mrb[30].mxu1 }
 0x92b   : > { %v5337_v14 = vpop.f32.mrb[31].mxu1 }
 0x932   : > { %v1922_v17 = vpop.f32.mrb[32].mxu1 }
 0x933   : > { %v5340_v36 = vsel %vm1926_vm5, %v1922_v17, 0.0  ;;  %v3979_v24 = vpop.f32.mrb[33].mxu1  ;;  %3980 = vmatprep.subr.msk.mxu1 %vm1926_vm5, %v1922_v17 }
 0x934   : > { %3981 = vmatpush3.msk.msra.mxu1 %vm1926_vm5, %v1922_v17 }
 0x935   : > { %3983 = vmatmul.mubr.msk.f32.vlgmr.msra.gmra.mrb[34].mxu1 %vm622_vm3, %v4994_v3  ;;  %4459 = vmatprep.subr.bf16.mxu1 %v5810_v42 }
 0x936   : > { %3985 = vmatprep.mubr.msk.f32.mxu1 %vm622_vm3, %v4996_v50 }
 0x939   : > { %3986 = vmatmul.mubr.msk.f32.gmra.mrb[36].mxu1 %vm622_vm3, %v4998_v63 }
 0x93a   : > { %3988 = vmatprep.mubr.msk.f32.mxu1 %vm622_vm3, %v5000_v53 }
 0x93d   : > { %3989 = vmatmul.mubr.msk.f32.gmra.mrb[38].mxu1 %vm622_vm3, %v5003_v48 }
 0x93e   : > { %3991 = vmatprep.mubr.msk.f32.mxu1 %vm622_vm3, %v5014_v47 }
 0x941   : > { %3992 = vmatmul.mubr.msk.f32.gmra.mrb[40].mxu1 %vm622_vm3, %v5823_v58 }
 0x942   : > { %4064 = vmatprep.mubr.msk.f32.mxu1 %vm4605_vm0, %v5813_v8 }
 0xa08   : > { %v3984_v37 = vpop.f32.mrb[34].mxu1 }
 0xa09   : > { %v2040_v28 = vmul.f32 0.4, %v3984_v37  ;;  %v1994_v0 = vpop.f32.mrb[35].mxu1 }
 0xa0a   : > { %v2039_v17 = vmul.f32 0.4, %v1994_v0 }
 0xa0b   : > { %v5360_v24 = vsub.f32 %v5066_v22, %v2040_v28 }
 0xa0c   : > { %v5363_v53 = vsub.f32 %v5069_v25, %v2039_v17  ;;  %v3987_v48 = vpop.f32.mrb[36].mxu1  ;;  %v2057_v17 = vmul.f32 0.4, %v1771_v34 }
 0xa0d   : > { %v2042_v63 = vmul.f32 0.4, %v3987_v48  ;;  %v2004_v50 = vpop.f32.mrb[37].mxu1 }
 0xa0e   : > { %v4424_v47 = vpack.c.bf16 %v5360_v24, %v5363_v53  ;;  %v2041_v58 = vmul.f32 0.4, %v2004_v50  ;;  %v5399_v34 = vsub.f32 %v5100_v40, %v2057_v17 }
 0xa0f   : > { %v5368_v3 = vsub.f32 %v5074_v38, %v2042_v63 }
 0xa10   : > { %v5371_v37 = vsub.f32 %v5824_v5, %v2041_v58  ;;  %v3990_v0 = vpop.f32.mrb[38].mxu1  ;;  %4425 = vmatpush3.bf16.msra.mxu0 %v4424_v47  ;;  %4461 = vmatpush3.bf16.msra.mxu1 %v4424_v47  ;;  %v2058_v47 = vmul.f32 0.4, %v3923_v12 }
 0xa11   : > { %v2044_v22 = vmul.f32 0.4, %v3990_v0  ;;  %v2014_v28 = vpop.f32.mrb[39].mxu1  ;;  %4426 = vmatprep.subr.bf16.mxu0 %v5810_v42  ;;  %4462 = vmatprep.subr.bf16.mxu1 %v5810_v42 }
 0xa12   : > { %v4427_v48 = vpack.c.bf16 %v5368_v3, %v5371_v37  ;;  %v2043_v25 = vmul.f32 0.4, %v2014_v28  ;;  %v5394_v12 = vsub.f32 %v5094_v39, %v2058_v47  ;;  %v2061_v39 = vmul.f32 0.4, %v5317_v11 }
 0xa13   : > { %v5378_v50 = vsub.f32 %v5084_v49, %v2044_v22  ;;  %v2060_v22 = vmul.f32 0.4, %v5311_v1  ;;  %v2066_v11 = vmul.f32 0.4, %v5323_v35 }
 0xa14   : > { %v5381_v63 = vsub.f32 %v5088_v2, %v2043_v25  ;;  %v3993_v38 = vpop.f32.mrb[40].mxu1  ;;  %4428 = vmatpush3.bf16.msra.mxu0 %v4427_v48  ;;  %4464 = vmatpush3.bf16.msra.mxu1 %v4427_v48  ;;  %v2062_v48 = vmul.f32 0.4, %v5315_v16  ;;  %v5410_v25 = vpack.c.bf16 %v5394_v12, %v5399_v34 }
 0xa15   : > { %v2046_v5 = vmul.f32 0.4, %v3993_v38  ;;  %v2024_v58 = vpop.f32.mrb[41].mxu1  ;;  %4429 = vmatprep.subr.bf16.mxu0 %v5810_v42  ;;  %4465 = vmatprep.subr.bf16.mxu1 %v5810_v42  ;;  %v5413_v40 = vsub.f32 %v5118_v19, %v2060_v22  ;;  %v5429_v19 = vsub.f32 %v5131_v51, %v2061_v39  ;;  %v2067_v38 = vmul.f32 0.4, %v5329_v27 }
 0xa16   : > { %v4430_v0 = vpack.c.bf16 %v5378_v50, %v5381_v63  ;;  %v2045_v28 = vmul.f32 0.4, %v2024_v58  ;;  %v2069_v27 = vmul.f32 0.4, %v5333_v61 }
 0xa17   : > { %v5388_v49 = vsub.f32 %v5097_v13, %v2046_v5  ;;  %v2059_v13 = vmul.f32 0.4, %v5313_v4  ;;  %v5426_v4 = vsub.f32 %v5128_v46, %v2062_v48  ;;  %v2072_v5 = vmul.f32 0.4, %v5335_v10 }
 0xa18   : > { %v5391_v2 = vsub.f32 %v5105_v21, %v2045_v28  ;;  %4431 = vmatpush3.bf16.msra.mxu0 %v4430_v0  ;;  %4467 = vmatpush3.bf16.msra.mxu1 %v4430_v0  ;;  %v2033_v10 = vrot.slane %v5340_v36, 4 }
 0xa19   : > { %4432 = vmatprep.subr.bf16.mxu0 %v5810_v42  ;;  %4468 = vmatprep.subr.bf16.mxu1 %v5810_v42  ;;  %v5416_v1 = vsub.f32 %v5121_v43, %v2059_v13  ;;  %v5441_v16 = vpack.c.bf16 %v5426_v4, %v5429_v19  ;;  %v5501_v58 = vsub.f32 %v5217_v33, %v2072_v5 }
 0xa1a   : > { %v4433_v21 = vpack.c.bf16 %v5388_v49, %v5391_v2  ;;  %v2034_v33 = vadd.f32 %v2033_v10, %v5340_v36 }
 0xa1b   : > { %v5434_v43 = vpack.c.bf16 %v5413_v40, %v5416_v1 }
 0xa1c   : > { %4434 = vmatpush3.bf16.msra.mxu0 %v4433_v21  ;;  %4470 = vmatpush3.bf16.msra.mxu1 %v4433_v21 }
 0xa1d   : > { %4435 = vmatprep.subr.bf16.mxu0 %v5810_v42 }
 0xa1f   : > { %4011 = vmatmul.mubr.msk.f32.vlgmr.msra.gmra.mrb[26].mxu0 %vm425_vm1, %v5042_v41  ;;  %4065 = vmatmul.mubr.msk.f32.vlgmr.msra.gmra.mrb[42].mxu1 %vm425_vm1, %v4804_v26  ;;  %v2064_v41 = vmul.f32 0.4, %v5319_v54  ;;  %v2063_v26 = vmul.f32 0.4, %v5321_v62  ;;  %v2065_v54 = vmul.f32 0.4, %v5325_v32  ;;  %v5471_v32 = vsub.f32 %v5180_v59, %v2067_v38 }
 0xa20   : > { %4437 = vmatpush3.bf16.msra.mxu0 %v5410_v25  ;;  %4045 = vmatprep.mubr.msk.f32.mxu0 %vm4605_vm0, %v5813_v8  ;;  %v2068_v62 = vmul.f32 0.4, %v5327_v57  ;;  %v5490_v59 = vsub.f32 %v5202_v60, %v2069_v27 }
 0xa21   : > { %4438 = vmatprep.subr.bf16.mxu0 %v5810_v42  ;;  %v5445_v46 = vsub.f32 %v5152_v18, %v2064_v41  ;;  %v5448_v51 = vsub.f32 %v5155_v52, %v2063_v26  ;;  %v5461_v18 = vsub.f32 %v5169_v23, %v2066_v11  ;;  %v5464_v52 = vsub.f32 %v5172_v55, %v2065_v54 }
 0xa22   : > { %v5468_v35 = vsub.f32 %v5177_v56, %v2068_v62  ;;  %v2070_v23 = vmul.f32 0.4, %v5331_v45  ;;  %v2071_v45 = vmul.f32 0.4, %v5337_v14  ;;  %v2035_v14 = vrot.slane %v2034_v33, 2 }
 0xa23   : > { %v5458_v47 = vpack.c.bf16 %v5445_v46, %v5448_v51  ;;  %v5476_v57 = vpack.c.bf16 %v5461_v18, %v5464_v52  ;;  %v1850_v54 = vrot.slane %v5270_v44, 4 }
 0xa24   : > { %4440 = vmatpush3.bf16.msra.mxu0 %v5434_v43  ;;  %v5483_v55 = vpack.c.bf16 %v5468_v35, %v5471_v32  ;;  %v5487_v56 = vsub.f32 %v5199_v30, %v2070_v23  ;;  %v5504_v30 = vsub.f32 %v5220_v6, %v2071_v45  ;;  %v2036_v17 = vadd.f32 %v2035_v14, %v2034_v33 }
 0xa25   : > { %4441 = vmatprep.subr.bf16.mxu0 %v5810_v42  ;;  %v1851_v23 = vadd.f32 %v1850_v54, %v5270_v44 }
 0xa26   : > { %v5498_v61 = vpack.c.bf16 %v5487_v56, %v5490_v59  ;;  %v5510_v60 = vpack.c.bf16 %v5501_v58, %v5504_v30  ;;  %v2037_v6 = vrot.slane %v2036_v17, 1 }
 0xa27   : > { %v1852_v27 = vrot.slane %v1851_v23, 2 }
 0xa28   : > { %4443 = vmatpush3.bf16.msra.mxu0 %v5441_v16  ;;  %v2038_v0 = vadd.f32 %v2037_v6, %v2036_v17 }
 0xa29   : > { %4444 = vmatprep.subr.bf16.mxu0 %v5810_v42  ;;  %v1853_v5 = vadd.f32 %v1852_v27, %v1851_v23 }
 0xa2a   : > { %v2055_v28 = vmul.f32 0.4, %v2038_v0 }
 0xa2b   : > { %v1854_v45 = vrot.slane %v1853_v5, 1 }
 0xa2c   : > { %4446 = vmatpush3.bf16.msra.mxu0 %v5458_v47  ;;  %v5517_v22 = vsub.f32 %v5246_v20, %v2055_v28  ;;  %v5825_v28 = vld [vmem:[#allocation6_spill] sm:$0xff] }
 0xa2d   : > { %4447 = vmatprep.subr.bf16.mxu0 %v5810_v42  ;;  %v1855_v10 = vadd.f32 %v1854_v45, %v1853_v5 }
 0xa2e   : > { %v2095_v13 = vrot.slane %v5517_v22, %v5816_v29 }
 0xa2f   : > { %v2089_v33 = vmul.f32 0.4, %v1855_v10 }
 0xa30   : > { %4449 = vmatpush3.bf16.msra.mxu0 %v5476_v57 }
 0xa31   : > { %4450 = vmatprep.subr.bf16.mxu0 %v5810_v42  ;;  %v5546_v14 = vsub.f32 %v5260_v9, %v2089_v33  ;;  %v4594_v33 = vld [vmem:[%s4911_s13] sm:$0xff] }
 0xa33   : > { %v2172_v17 = vrot.slane %v5546_v14, %v5816_v29 }
 0xa34   : > { %4452 = vmatpush3.bf16.msra.mxu0 %v5483_v55 }
 0xa35   : > { %4453 = vmatprep.subr.bf16.mxu0 %v5810_v42 }
 0xa38   : > { %4455 = vmatpush3.bf16.msra.mxu0 %v5498_v61 }
 0xa39   : > { %4456 = vmatprep.subr.bf16.mxu0 %v5810_v42 }
 0xa3c   : > { %4458 = vmatpush3.bf16.msra.mxu0 %v5510_v60 }
 0xa3d   : > { %4471 = vmatprep.subr.bf16.mxu0 %v5810_v42 }
 0xaf2   : > { %v2163_v21 = vpop.f32.mrb[26].mxu0  ;;  %v2341_v48 = vpop.f32.mrb[42].mxu1 }
 0xaf3   : > { %v2164_v39 = vadd.f32 %v2163_v21, %v2095_v13  ;;  %v4012_v41 = vpop.f32.mrb[27].mxu0  ;;  %v4066_v26 = vpop.f32.mrb[43].mxu1  ;;  %v2342_v20 = vadd.f32 %v2341_v48, %v2095_v13  ;;  %v5552_v13 = vadd.f32 %v5248_v7, %v5825_v28  ;;  %v5826_v48 = vld [vmem:[#allocation3_spill] sm:$0xff] }
 0xaf5   : > { %v2167_v11 = vmax.f32 %v2164_v39, 0.0  ;;  %v5538_v36 = vmax.f32 %v2342_v20, 0.0  ;;  %v5559_v21 = vsel %vm418_vm2, %v5552_v13, -1e+30  ;;  %v1441_v39 = vsel %vm418_vm2, %v5826_v48, -1e+30 }
 0xaf7   : > { %4046 = vmatmul.mubr.f32.vlgmr.msra.gmra.mrb[28].mxu0 %v2167_v11  ;;  %vm2729_vm6 = vcmp.gt.f32.partialorder %v5538_v36, 0.0 }
 0xaf8   : > { %4473 = vmatpush3.bf16.msra.mxu0 %v5410_v25  ;;  %4099 = vmatprep.mubr.msk.f32.mxu0 %vm4605_vm0, %v5813_v8 }
 0xaf9   : > { %4474 = vmatprep.subr.bf16.mxu0 %v5810_v42 }
 0xafc   : > { %4476 = vmatpush3.bf16.msra.mxu0 %v5434_v43 }
 0xafd   : > { %4477 = vmatprep.subr.bf16.mxu0 %v5810_v42 }
 0xb00   : > { %4479 = vmatpush3.bf16.msra.mxu0 %v5441_v16 }
 0xb01   : > { %4480 = vmatprep.subr.bf16.mxu0 %v5810_v42 }
 0xb04   : > { %4482 = vmatpush3.bf16.msra.mxu0 %v5458_v47 }
 0xb05   : > { %4483 = vmatprep.subr.bf16.mxu0 %v5810_v42 }
 0xb08   : > { %4485 = vmatpush3.bf16.msra.mxu0 %v5476_v57 }
 0xb09   : > { %4486 = vmatprep.subr.bf16.mxu0 %v5810_v42 }
 0xb0c   : > { %4488 = vmatpush3.bf16.msra.mxu0 %v5483_v55 }
 0xb0d   : > { %4489 = vmatprep.subr.bf16.mxu0 %v5810_v42 }
 0xb10   : > { %4491 = vmatpush3.bf16.msra.mxu0 %v5498_v61 }
 0xb11   : > { %4492 = vmatprep.subr.bf16.mxu0 %v5810_v42 }
 0xb14   : > { %4494 = vmatpush3.bf16.msra.mxu0 %v5510_v60 }
 0xb17   : > { %4100 = vmatmul.mubr.f32.vlgmr.msra.gmra.mrb[30].mxu0 %v5538_v36 }
 0xb18   : > { %4165 = vmatprep.mubr.msk.f32.mxu0 %vm622_vm3, %v5822_v31 }
 0xbca   : > { %v2240_v62 = vpop.f32.mrb[28].mxu0 }
 0xbcb   : > { %v4047_v38 = vpop.f32.mrb[29].mxu0  ;;  %v5562_v9 = vadd.f32 %v2240_v62, %v2172_v17 }
 0xbcd   : > { %v5570_v7 = vsel %vm418_vm2, %v5562_v9, -1e+30 }
 0xbea   : > { %v2412_v6 = vpop.f32.mrb[30].mxu0 }
 0xbeb   : > { %v2413_v0 = vadd.f32 %v2412_v6, %v2172_v17  ;;  %v4101_v31 = vpop.f32.mrb[31].mxu0 }
 0xbed   : > { %v2416_v44 = vsel %vm418_vm2, %v2413_v0, -1e+30 }
 0xbee   : > { %2417 = vmax.xlane.f32.xlu0 %v2416_v44 }
 0xbf2   : > { %1258 = vmax.xlane.f32.xlu0 %v5559_v21 }
 0xbf6   : > { %1442 = vmax.xlane.f32.xlu0 %v1441_v39 }
 0xbfa   : > { %2245 = vmax.xlane.f32.xlu0 %v5570_v7 }
 0xc7b   : > { %v2418_v41 = vpop.xlane.xlu0 %2417 }
 0xc7c   : > { %v2419_v26 = vsub.f32 %v2416_v44, %v2418_v41 }
 0xc7e   : > { %v2420_v11 = vmul.f32 1.442695, %v2419_v26 }
 0xc7f   : > { %v5574_v54 = vpop.xlane.xlu0 %1258 }
 0xc80   : > { %4574 = vpow2.f32 %v2420_v11 }
 0xc83   : > { %v5576_v62 = vpop.xlane.xlu0 %1442 }
 0xc84   : > { %v1444_v38 = vsub.f32 %v1441_v39, %v5576_v62 }
 0xc86   : > { %v1445_v23 = vmul.f32 1.442695, %v1444_v38 }
 0xc88   : > { %4576 = vpow2.f32 %v1445_v23 }
 0xc8a   : > { %v4575_v20 = vpop.eup %4574 }
 0xc8b   : > { %2422 = vadd.xlane.f32.xlu1 %v4575_v20 }
 0xc92   : > { %v4577_v5 = vpop.eup %4576 }
 0xcbe   : > { %2428 = vxpose.xlu1.b32.start.end [1/1] (short) %v5538_v36, 128  ;;  %v5831_v36 = vld [vmem:[#allocation14_spill] sm:$0xff] }
 0xd18   : > { %v2423_v27 = vpop.xlane.xlu1 %2422 }
 0xd19   : > { %4578 = vrcp.f32 %v2423_v27 }
 0xd21   : > { %1447 = vadd.xlane.f32.xlu1 %v4577_v5 }
 0xd23   : > { %v4579_v45 = vpop.eup %4578 }
 0xd24   : > { %v2425_v10 = vmul.f32 %v4579_v45, %v4575_v20 }
 0xd26   : > { %v2426_v17 = vsub.f32 %v2425_v10, %v4594_v33 }
 0xd28   : > { %v5580_v6 = vmul.f32 0.125, %v2426_v17 }
 0xd2a   : > { %4102 = vmatprep.subr.mxu1 %v5580_v6 }
 0xd2b   : > { %4103 = vmatpush3.msra.mxu1 %v5580_v6 }
 0xd2c   : > { %4495 = vmatprep.subr.bf16.mxu1 %v5810_v42 }
 0xd3e   : > { %v2444_v0 = vpop.trf.xlu1 }
 0xd3f   : > { %4104 = vmatprep.mubr.msk.f32.mxu1 %vm622_vm3, %v2444_v0 }
 0xd42   : > { %v2445_v31 = vpop.trf.xlu1 }
 0xd43   : > { %4105 = vmatmul.mubr.msk.f32.vlgmr.msra.gmra.mrb[44].mxu1 %vm622_vm3, %v2445_v31 }
 0xd44   : > { %4497 = vmatpush3.bf16.xpose.msra.mxu1 %v5410_v25 }
 0xd45   : > { %4498 = vmatprep.subr.bf16.mxu1 %v5810_v42 }
 0xd46   : > { %v2446_v28 = vpop.trf.xlu1 }
 0xd47   : > { %4107 = vmatprep.mubr.msk.f32.mxu1 %vm622_vm3, %v2446_v28 }
 0xd4a   : > { %v2447_v44 = vpop.trf.xlu1 }
 0xd4b   : > { %4108 = vmatmul.mubr.msk.f32.gmra.mrb[46].mxu1 %vm622_vm3, %v2447_v44 }
 0xd4c   : > { %4500 = vmatpush3.bf16.xpose.msra.mxu1 %v5434_v43 }
 0xd4d   : > { %4501 = vmatprep.subr.bf16.mxu1 %v5810_v42 }
 0xd4e   : > { %v2448_v39 = vpop.trf.xlu1 }
 0xd4f   : > { %4110 = vmatprep.mubr.msk.f32.mxu1 %vm622_vm3, %v2448_v39 }
 0xd52   : > { %v2449_v41 = vpop.trf.xlu1 }
 0xd53   : > { %4111 = vmatmul.mubr.msk.f32.gmra.mrb[48].mxu1 %vm622_vm3, %v2449_v41 }
 0xd54   : > { %4503 = vmatpush3.bf16.xpose.msra.mxu1 %v5441_v16 }
 0xd55   : > { %4504 = vmatprep.subr.bf16.mxu1 %v5810_v42 }
 0xd56   : > { %v2450_v25 = vpop.trf.xlu1 }
 0xd57   : > { %4113 = vmatprep.mubr.msk.f32.mxu1 %vm622_vm3, %v2450_v25 }
 0xd5a   : > { %v2451_v26 = vpop.trf.xlu1 }
 0xd5b   : > { %4114 = vmatmul.mubr.msk.f32.gmra.mrb[50].mxu1 %vm622_vm3, %v2451_v26 }
 0xd5c   : > { %4506 = vmatpush3.bf16.xpose.msra.mxu1 %v5458_v47 }
 0xd5d   : > { %4507 = vmatprep.subr.bf16.mxu1 %v5810_v42 }
 0xd5e   : > { %v2452_v43 = vpop.trf.xlu1 }
 0xd5f   : > { %4116 = vmatprep.mubr.msk.f32.mxu1 %vm622_vm3, %v2452_v43 }
 0xd62   : > { %v2453_v11 = vpop.trf.xlu1 }
 0xd63   : > { %4117 = vmatmul.mubr.msk.f32.gmra.mrb[52].mxu1 %vm622_vm3, %v2453_v11 }
 0xd64   : > { %4509 = vmatpush3.bf16.xpose.msra.mxu1 %v5476_v57 }
 0xd65   : > { %4510 = vmatprep.subr.bf16.mxu1 %v5810_v42 }
 0xd66   : > { %v2454_v16 = vpop.trf.xlu1 }
 0xd67   : > { %4119 = vmatprep.mubr.msk.f32.mxu1 %vm622_vm3, %v2454_v16 }
 0xd6a   : > { %v2455_v20 = vpop.trf.xlu1 }
 0xd6b   : > { %4120 = vmatmul.mubr.msk.f32.gmra.mrb[54].mxu1 %vm622_vm3, %v2455_v20 }
 0xd6c   : > { %4512 = vmatpush3.bf16.xpose.msra.mxu1 %v5483_v55 }
 0xd6d   : > { %4513 = vmatprep.subr.bf16.mxu1 %v5810_v42 }
 0xd6e   : > { %v2456_v47 = vpop.trf.xlu1 }
 0xd6f   : > { %4122 = vmatprep.mubr.msk.f32.mxu1 %vm622_vm3, %v2456_v47 }
 0xd72   : > { %v2457_v38 = vpop.trf.xlu1 }
 0xd73   : > { %4123 = vmatmul.mubr.msk.f32.gmra.mrb[56].mxu1 %vm622_vm3, %v2457_v38 }
 0xd74   : > { %4515 = vmatpush3.bf16.xpose.msra.mxu1 %v5498_v61 }
 0xd75   : > { %4516 = vmatprep.subr.bf16.mxu1 %v5810_v42 }
 0xd76   : > { %v2458_v57 = vpop.trf.xlu1 }
 0xd77   : > { %4125 = vmatprep.mubr.msk.f32.mxu1 %vm622_vm3, %v2458_v57 }
 0xd7a   : > { %v2459_v23 = vpop.trf.xlu1 }
 0xd7b   : > { %4126 = vmatmul.mubr.msk.f32.gmra.mrb[58].mxu1 %vm622_vm3, %v2459_v23 }
 0xd7c   : > { %4518 = vmatpush3.bf16.xpose.msra.mxu1 %v5510_v60  ;;  %4160 = vmatprep.mubr.msk.f32.mxu1 %vm4605_vm0, %v5813_v8 }
 0xd83   : > { %4161 = vmatmul.mubr.f32.vlgmr.msra.gmra.mrb[60].mxu1 %v5580_v6 }
 0xe16   : > { %v4106_v55 = vpop.f32.mrb[44].mxu1 }
 0xe17   : > { %v2861_v27 = vmul.f32 0.4, %v4106_v55  ;;  %v2574_v5 = vpop.f32.mrb[45].mxu1 }
 0xe18   : > { %v2860_v45 = vmul.f32 0.4, %v2574_v5 }
 0xe19   : > { %v2877_v61 = vsub.f32 %v5394_v12, %v2861_v27 }
 0xe1a   : > { %v2876_v10 = vsub.f32 %v5399_v34, %v2860_v45 }
 0xe1c   : > { %v5621_v33 = vpack.c.bf16 %v2877_v61, %v2876_v10 }
 0xe1e   : > { %v4109_v17 = vpop.f32.mrb[46].mxu1 }
 0xe1f   : > { %v2863_v0 = vmul.f32 0.4, %v4109_v17  ;;  %v2584_v31 = vpop.f32.mrb[47].mxu1 }
 0xe20   : > { %v2862_v28 = vmul.f32 0.4, %v2584_v31 }
 0xe21   : > { %v2879_v60 = vsub.f32 %v5413_v40, %v2863_v0 }
 0xe22   : > { %v2878_v44 = vsub.f32 %v5416_v1, %v2862_v28 }
 0xe24   : > { %v5625_v39 = vpack.c.bf16 %v2879_v60, %v2878_v44 }
 0xe26   : > { %v4112_v41 = vpop.f32.mrb[48].mxu1 }
 0xe27   : > { %v2865_v25 = vmul.f32 0.4, %v4112_v41  ;;  %v2594_v26 = vpop.f32.mrb[49].mxu1 }
 0xe28   : > { %v2864_v43 = vmul.f32 0.4, %v2594_v26 }
 0xe29   : > { %v2881_v12 = vsub.f32 %v5426_v4, %v2865_v25 }
 0xe2a   : > { %v2880_v34 = vsub.f32 %v5429_v19, %v2864_v43 }
 0xe2c   : > { %v5629_v11 = vpack.c.bf16 %v2881_v12, %v2880_v34 }
 0xe2e   : > { %v4115_v16 = vpop.f32.mrb[50].mxu1 }
 0xe2f   : > { %v2867_v20 = vmul.f32 0.4, %v4115_v16  ;;  %v2604_v47 = vpop.f32.mrb[51].mxu1 }
 0xe30   : > { %v2866_v38 = vmul.f32 0.4, %v2604_v47 }
 0xe31   : > { %v2883_v40 = vsub.f32 %v5445_v46, %v2867_v20 }
 0xe32   : > { %v2882_v1 = vsub.f32 %v5448_v51, %v2866_v38  ;;  %v5828_v38 = vld [vmem:[#allocation11_spill] sm:$0xff] }
 0xe34   : > { %v5633_v57 = vpack.c.bf16 %v2883_v40, %v2882_v1  ;;  %v5832_v40 = vld [vmem:[#allocation15_spill] sm:$0xff]  ;;  %v5833_v1 = vld [vmem:[#allocation16_spill] sm:$0xff] }
 0xe36   : > { %v4118_v23 = vpop.f32.mrb[52].mxu1 }
 0xe37   : > { %v2869_v55 = vmul.f32 0.4, %v4118_v23  ;;  %v2614_v27 = vpop.f32.mrb[53].mxu1 }
 0xe38   : > { %v2868_v5 = vmul.f32 0.4, %v2614_v27 }
 0xe39   : > { %v2885_v4 = vsub.f32 %v5461_v18, %v2869_v55 }
 0xe3a   : > { %v2884_v19 = vsub.f32 %v5464_v52, %v2868_v5 }
 0xe3c   : > { %v5637_v45 = vpack.c.bf16 %v2885_v4, %v2884_v19 }
 0xe3e   : > { %v4121_v61 = vpop.f32.mrb[54].mxu1 }
 0xe3f   : > { %v2871_v10 = vmul.f32 0.4, %v4121_v61  ;;  %v2624_v17 = vpop.f32.mrb[55].mxu1 }
 0xe40   : > { %v2870_v0 = vmul.f32 0.4, %v2624_v17 }
 0xe41   : > { %v2887_v46 = vsub.f32 %v5468_v35, %v2871_v10 }
 0xe42   : > { %v2886_v51 = vsub.f32 %v5471_v32, %v2870_v0 }
 0xe44   : > { %v5641_v31 = vpack.c.bf16 %v2887_v46, %v2886_v51 }
 0xe46   : > { %v4124_v28 = vpop.f32.mrb[56].mxu1 }
 0xe47   : > { %v2873_v60 = vmul.f32 0.4, %v4124_v28  ;;  %v2634_v44 = vpop.f32.mrb[57].mxu1 }
 0xe48   : > { %v2872_v41 = vmul.f32 0.4, %v2634_v44 }
 0xe49   : > { %v2889_v18 = vsub.f32 %v5487_v56, %v2873_v60 }
 0xe4a   : > { %v2888_v52 = vsub.f32 %v5490_v59, %v2872_v41  ;;  %v5827_v59 = vld [vmem:[#allocation10_spill] sm:$0xff] }
 0xe4c   : > { %v5645_v25 = vpack.c.bf16 %v2889_v18, %v2888_v52 }
 0xe4e   : > { %v4127_v26 = vpop.f32.mrb[58].mxu1 }
 0xe4f   : > { %v2875_v43 = vmul.f32 0.4, %v4127_v26  ;;  %v2644_v12 = vpop.f32.mrb[59].mxu1 }
 0xe50   : > { %v2874_v34 = vmul.f32 0.4, %v2644_v12 }
 0xe51   : > { %v2891_v35 = vsub.f32 %v5501_v58, %v2875_v43  ;;  %v5829_v58 = vld [vmem:[#allocation12_spill] sm:$0xff] }
 0xe52   : > { %v2890_v32 = vsub.f32 %v5504_v30, %v2874_v34  ;;  %v5830_v30 = vld [vmem:[#allocation13_spill] sm:$0xff] }
 0xe54   : > { %v5649_v16 = vpack.c.bf16 %v2891_v35, %v2890_v32 }
 0xe56   : > { %v2725_v20 = vpop.f32.mrb[60].mxu1 }
 0xe57   : > { %v5652_v47 = vsel %vm2729_vm6, %v2725_v20, 0.0  ;;  %v4162_v56 = vpop.f32.mrb[61].mxu1  ;;  %4163 = vmatprep.subr.msk.mxu0 %vm2729_vm6, %v2725_v20 }
 0xe58   : > { %4164 = vmatpush3.msk.msra.mxu0 %vm2729_vm6, %v2725_v20 }
 0xe59   : > { %4166 = vmatmul.mubr.msk.f32.vlgmr.msra.gmra.mrb[32].mxu0 %vm622_vm3, %v5827_v59  ;;  %4519 = vmatprep.subr.bf16.mxu0 %v5810_v42 }
 0xe5a   : > { %4168 = vmatprep.mubr.msk.f32.mxu0 %vm622_vm3, %v5828_v38 }
 0xe5d   : > { %4169 = vmatmul.mubr.msk.f32.gmra.mrb[34].mxu0 %vm622_vm3, %v5829_v58 }
 0xe5e   : > { %4171 = vmatprep.mubr.msk.f32.mxu0 %vm622_vm3, %v5830_v30 }
 0xe61   : > { %4172 = vmatmul.mubr.msk.f32.gmra.mrb[36].mxu0 %vm622_vm3, %v5831_v36  ;;  %v1260_v36 = vsub.f32 %v5559_v21, %v5574_v54 }
 0xe62   : > { %4174 = vmatprep.mubr.msk.f32.mxu0 %vm622_vm3, %v5832_v40  ;;  %v5710_v40 = vpop.xlane.xlu0 %2245 }
 0xe65   : > { %4175 = vmatmul.mubr.msk.f32.gmra.mrb[38].mxu0 %vm622_vm3, %v5833_v1  ;;  %v1261_v1 = vmul.f32 1.442695, %v1260_v36 }
 0xe66   : > { %4193 = vmatprep.mubr.msk.f32.mxu0 %vm4605_vm0, %v5813_v8 }
 0xe67   : > { %4580 = vpow2.f32 %v1261_v1 }
 0xf2c   : > { %v4167_v23 = vpop.f32.mrb[32].mxu0 }
 0xf2d   : > { %v2843_v55 = vmul.f32 0.4, %v4167_v23  ;;  %v2797_v27 = vpop.f32.mrb[33].mxu0  ;;  %v2247_v23 = vsub.f32 %v5570_v7, %v5710_v40 }
 0xf2e   : > { %v2842_v5 = vmul.f32 0.4, %v2797_v27 }
 0xf2f   : > { %v2851_v4 = vsub.f32 %v5360_v24, %v2843_v55  ;;  %v2248_v27 = vmul.f32 1.442695, %v2247_v23 }
 0xf30   : > { %v2850_v19 = vsub.f32 %v5363_v53, %v2842_v5  ;;  %v4170_v61 = vpop.f32.mrb[34].mxu0 }
 0xf31   : > { %v2845_v10 = vmul.f32 0.4, %v4170_v61  ;;  %v2807_v17 = vpop.f32.mrb[35].mxu0  ;;  %4582 = vpow2.f32 %v2248_v27  ;;  %v4581_v61 = vpop.eup %4580 }
 0xf32   : > { %v4520_v0 = vpack.c.bf16 %v2851_v4, %v2850_v19  ;;  %v2844_v46 = vmul.f32 0.4, %v2807_v17 }
 0xf33   : > { %v2853_v51 = vsub.f32 %v5368_v3, %v2845_v10 }
 0xf34   : > { %v2852_v28 = vsub.f32 %v5371_v37, %v2844_v46  ;;  %v4173_v60 = vpop.f32.mrb[36].mxu0  ;;  %4521 = vmatpush3.bf16.msra.mxu0 %v4520_v0  ;;  %v389_v0 = vld [vmem:[%s379_s19] sm:$0xff] }
 0xf35   : > { %v2847_v44 = vmul.f32 0.4, %v4173_v60  ;;  %v2817_v41 = vpop.f32.mrb[37].mxu0  ;;  %4522 = vmatprep.subr.bf16.mxu0 %v5810_v42  ;;  %v1268_v46 = vmul.f32 %v5552_v13, %v389_v0 }
 0xf36   : > { %v4523_v18 = vpack.c.bf16 %v2853_v51, %v2852_v28  ;;  %v2846_v52 = vmul.f32 0.4, %v2817_v41  ;;  %v1452_v51 = vmul.f32 %v5826_v48, %v389_v0  ;;  %v2255_v28 = vmul.f32 %v5562_v9, %v389_v0  ;;  %v1448_v41 = vpop.xlane.xlu1 %1447 }
 0xf37   : > { %v2855_v24 = vsub.f32 %v5378_v50, %v2847_v44  ;;  %v4595_v50 = vld [vmem:[%s5034_s16] sm:$0xff] }
 0xf38   : > { %v2854_v53 = vsub.f32 %v5381_v63, %v2846_v52  ;;  %v4176_v26 = vpop.f32.mrb[38].mxu0  ;;  %4524 = vmatpush3.bf16.msra.mxu0 %v4523_v18  ;;  %v2836_v63 = vrot.slane %v5652_v47, 4 }
 0xf39   : > { %v2849_v43 = vmul.f32 0.4, %v4176_v26  ;;  %v2827_v12 = vpop.f32.mrb[39].mxu0  ;;  %4525 = vmatprep.subr.bf16.mxu0 %v5810_v42 }
 0xf3a   : > { %v4526_v3 = vpack.c.bf16 %v2855_v24, %v2854_v53  ;;  %v2848_v37 = vmul.f32 0.4, %v2827_v12 }
 0xf3b   : > { %v2857_v34 = vsub.f32 %v5388_v49, %v2849_v43  ;;  %v2837_v49 = vadd.f32 %v2836_v63, %v5652_v47  ;;  %v4583_v10 = vpop.eup %4582 }
 0xf3c   : > { %v2856_v35 = vsub.f32 %v5391_v2, %v2848_v37  ;;  %4527 = vmatpush3.bf16.msra.mxu0 %v4526_v3 }
 0xf3d   : > { %4528 = vmatprep.subr.bf16.mxu0 %v5810_v42  ;;  %v2838_v2 = vrot.slane %v2837_v49, 2 }
 0xf3e   : > { %v4529_v32 = vpack.c.bf16 %v2857_v34, %v2856_v35 }
 0xf40   : > { %4530 = vmatpush3.bf16.msra.mxu0 %v4529_v32 }
 0xf41   : > { %4531 = vmatprep.subr.bf16.mxu0 %v5810_v42 }
 0xf43   : > { %4194 = vmatmul.mubr.msk.f32.vlgmr.msra.gmra.mrb[40].mxu0 %vm425_vm1, %v4595_v50 }
 0xf44   : > { %4533 = vmatpush3.bf16.msra.mxu0 %v5621_v33  ;;  %4228 = vmatprep.mubr.msk.f32.mxu0 %vm4605_vm0, %v5813_v8  ;;  %v2839_v33 = vadd.f32 %v2838_v2, %v2837_v49 }
 0xf45   : > { %4534 = vmatprep.subr.bf16.mxu0 %v5810_v42 }
 0xf48   : > { %4536 = vmatpush3.bf16.msra.mxu0 %v5625_v39  ;;  %v2840_v39 = vrot.slane %v2839_v33, 1 }
 0xf49   : > { %4537 = vmatprep.subr.bf16.mxu0 %v5810_v42 }
 0xf4c   : > { %4539 = vmatpush3.bf16.msra.mxu0 %v5629_v11  ;;  %v2841_v11 = vadd.f32 %v2840_v39, %v2839_v33 }
 0xf4d   : > { %4540 = vmatprep.subr.bf16.mxu0 %v5810_v42 }
 0xf50   : > { %4542 = vmatpush3.bf16.msra.mxu0 %v5633_v57  ;;  %v2858_v57 = vmul.f32 0.4, %v2841_v11 }
 0xf51   : > { %4543 = vmatprep.subr.bf16.mxu0 %v5810_v42 }
 0xf54   : > { %4545 = vmatpush3.bf16.msra.mxu0 %v5637_v45  ;;  %v2859_v45 = vsub.f32 %v5517_v22, %v2858_v57 }
 0xf55   : > { %4546 = vmatprep.subr.bf16.mxu0 %v5810_v42 }
 0xf58   : > { %4548 = vmatpush3.bf16.msra.mxu0 %v5641_v31  ;;  %v2898_v31 = vrot.slane %v2859_v45, %v5816_v29 }
 0xf59   : > { %4549 = vmatprep.subr.bf16.mxu0 %v5810_v42 }
 0xf5c   : > { %4551 = vmatpush3.bf16.msra.mxu0 %v5645_v25 }
 0xf5d   : > { %4552 = vmatprep.subr.bf16.mxu0 %v5810_v42  ;;  %v2653_v42 = vrot.slane %v5580_v6, 4 }
 0xf60   : > { %4554 = vmatpush3.bf16.msra.mxu0 %v5649_v16  ;;  %v2654_v16 = vadd.f32 %v2653_v42, %v5580_v6 }
 0xf62   : > { %v2655_v38 = vrot.slane %v2654_v16, 2 }
 0xf64   : > { %v2656_v47 = vadd.f32 %v2655_v38, %v2654_v16 }
 0xf66   : > { %v2657_v58 = vrot.slane %v2656_v47, 1 }
 0xf68   : > { %v2658_v30 = vadd.f32 %v2657_v58, %v2656_v47 }
 0xf6a   : > { %v2892_v22 = vmul.f32 0.4, %v2658_v30 }
 0xf6c   : > { %v2893_v55 = vsub.f32 %v5546_v14, %v2892_v22 }
 0xf6e   : > { %v2975_v6 = vrot.slane %v2893_v55, %v5816_v29 }
0x1016   : > { %v2966_v20 = vpop.f32.mrb[40].mxu0 }
0x1017   : > { %v2967_v56 = vadd.f32 %v2966_v20, %v2898_v31  ;;  %v4195_v25 = vpop.f32.mrb[41].mxu0 }
0x1019   : > { %v2970_v59 = vmax.f32 %v2967_v56, 0.0 }
0x101b   : > { %4229 = vmatmul.mubr.f32.vlgmr.msra.gmra.mrb[42].mxu0 %v2970_v59 }
0x10ee   : > { %v3043_v5 = vpop.f32.mrb[42].mxu0 }
0x10ef   : > { %v3044_v4 = vadd.f32 %v3043_v5, %v2975_v6  ;;  %v4230_v19 = vpop.f32.mrb[43].mxu0 }
0x10f1   : > { %v3047_v21 = vsel %vm418_vm2, %v3044_v4, -1e+30  ;;  %v3058_v60 = vmul.f32 %v3044_v4, %v389_v0 }
0x10f2   : > { %3048 = vmax.xlane.f32.xlu0 %v3047_v21 }
0x10f6   : > { %1263 = vadd.xlane.f32.xlu0 %v4581_v61 }
0x10fa   : > { %2250 = vadd.xlane.f32.xlu0 %v4583_v10 }
0x117f   : > { %v5718_v7 = vpop.xlane.xlu0 %3048 }
0x1180   : > { %v3050_v14 = vsub.f32 %v3047_v21, %v5718_v7 }
0x1182   : > { %v3051_v17 = vmul.f32 1.442695, %v3050_v14 }
0x1183   : > { %v1264_v44 = vpop.xlane.xlu0 %1263 }
0x1184   : > { %4584 = vpow2.f32 %v3051_v17 }
0x1185   : > { %4586 = vlog2.f32 %v1264_v44 }
0x1186   : > { %4588 = vlog2.f32 %v1448_v41 }
0x1187   : > { %v2251_v18 = vpop.xlane.xlu0 %2250 }
0x1188   : > { %4590 = vlog2.f32 %v2251_v18 }
0x118e   : > { %v4585_v29 = vpop.eup %4584 }
0x118f   : > { %3053 = vadd.xlane.f32.xlu0 %v4585_v29  ;;  %v4587_v52 = vpop.eup %4586 }
0x1190   : > { %v1266_v24 = vmul.f32 0.6931472, %v4587_v52  ;;  %v4589_v53 = vpop.eup %4588 }
0x1191   : > { %v1450_v13 = vmul.f32 0.6931472, %v4589_v53  ;;  %v3311_v53 = vsel %vm3078_vm12, 1.0, %v5813_v8 }
0x1192   : > { %v1267_v48 = vadd.f32 %v1266_v24, %v5574_v54  ;;  %v4591_v12 = vpop.eup %4590 }
0x1193   : > { %1269 = vadd.xlane.f32.xlu0 %v1268_v46  ;;  %v1451_v35 = vadd.f32 %v1450_v13, %v5576_v62  ;;  %v2253_v32 = vmul.f32 0.6931472, %v4591_v12 }
0x1195   : > { %v2254_v31 = vadd.f32 %v2253_v32, %v5710_v40 }
0x1197   : > { %1453 = vadd.xlane.f32.xlu0 %v1452_v51 }
0x119b   : > { %2256 = vadd.xlane.f32.xlu0 %v2255_v28 }
0x119f   : > { %3059 = vadd.xlane.f32.xlu0 %v3058_v60 }
0x121c   : > { %v3054_v26 = vpop.xlane.xlu0 %3053 }
0x121d   : > { %4592 = vlog2.f32 %v3054_v26 }
0x1220   : > { %v1270_v43 = vpop.xlane.xlu0 %1269 }
0x1221   : > { %v1271_v9 = vsub.f32 %v1267_v48, %v1270_v43  ;;  %vm1279_vm7 = vcmp.ge.f32.partialorder %v1270_v43, %v5574_v54 }
0x1222   : > { %v3252_v3 = vsel %vm1279_vm7, 1.0, %v5813_v8 }
0x1223   : > { %v1272_v37 = vrot.slane %v1271_v9, 4  ;;  %v1282_v34 = vrot.slane %v3252_v3, 4 }
0x1224   : > { %v1454_v50 = vpop.xlane.xlu0 %1453 }
0x1225   : > { %v1273_v63 = vadd.f32 %v1272_v37, %v1271_v9  ;;  %v1283_v49 = vadd.f32 %v3252_v3, %v1282_v34  ;;  %v1455_v2 = vsub.f32 %v1451_v35, %v1454_v50  ;;  %vm1463_vm8 = vcmp.ge.f32.partialorder %v1454_v50, %v5576_v62 }
0x1226   : > { %v3254_v33 = vsel %vm1463_vm8, 1.0, %v5813_v8  ;;  %v3313_v37 = vsel %vm3092_vm13, 1.0, %v5813_v8 }
0x1227   : > { %v4593_v39 = vpop.eup %4592  ;;  %v1274_v11 = vrot.slane %v1273_v63, 2  ;;  %v1456_v57 = vrot.slane %v1455_v2, 4  ;;  %v1466_v45 = vrot.slane %v3254_v33, 4  ;;  %v1284_v25 = vrot.slane %v1283_v49, 2 }
0x1228   : > { %v3056_v54 = vmul.f32 0.6931472, %v4593_v39  ;;  %v2257_v20 = vpop.xlane.xlu0 %2256 }
0x1229   : > { %v1275_v56 = vadd.f32 %v1274_v11, %v1273_v63  ;;  %v1457_v59 = vadd.f32 %v1456_v57, %v1455_v2  ;;  %v1467_v42 = vadd.f32 %v3254_v33, %v1466_v45  ;;  %v2258_v16 = vsub.f32 %v2254_v31, %v2257_v20 }
0x122a   : > { %vm2266_vm9 = vcmp.ge.f32.partialorder %v2257_v20, %v5710_v40  ;;  %v3057_v38 = vadd.f32 %v3056_v54, %v5718_v7  ;;  %v1285_v1 = vadd.f32 %v1284_v25, %v1283_v49  ;;  %v3314_v2 = vsel %vm3099_vm14, 1.0, %v5813_v8 }
0x122b   : > { %v1458_v62 = vrot.slane %v1457_v59, 2  ;;  %v1468_v47 = vrot.slane %v1467_v42, 2  ;;  %v2259_v58 = vrot.slane %v2258_v16, 4  ;;  %v3282_v30 = vsel %vm2266_vm9, 1.0, %v5813_v8 }
0x122c   : > { %v3060_v36 = vpop.xlane.xlu0 %3059  ;;  %v1276_v22 = vrot.slane %v1275_v56, 1  ;;  %v2269_v6 = vrot.slane %v3282_v30, 4  ;;  %v1286_v14 = vrot.slane %v1285_v1, 1 }
0x122d   : > { %v1459_v23 = vadd.f32 %v1458_v62, %v1457_v59  ;;  %v1469_v55 = vadd.f32 %v1468_v47, %v1467_v42  ;;  %v2260_v27 = vadd.f32 %v2259_v58, %v2258_v16  ;;  %v3061_v5 = vsub.f32 %v3057_v38, %v3060_v36 }
0x122e   : > { %vm3069_vm10 = vcmp.ge.f32.partialorder %v3060_v36, %v5718_v7  ;;  %v2270_v21 = vadd.f32 %v3282_v30, %v2269_v6  ;;  %v1277_v0 = vadd.f32 %v1276_v22, %v1275_v56  ;;  %v3312_v7 = vsel %vm3085_vm11, 1.0, %v5813_v8 }
0x122f   : > { %v1460_v40 = vrot.slane %v1459_v23, 1  ;;  %v1470_v4 = vrot.slane %v1469_v55, 1  ;;  %v2261_v19 = vrot.slane %v2260_v27, 2  ;;  %v3062_v61 = vrot.slane %v3061_v5, 4 }
0x1230   : > { %v3310_v10 = vsel %vm3069_vm10, 1.0, %v5813_v8  ;;  %v2271_v51 = vrot.slane %v2270_v21, 2  ;;  %v1287_v26 = vadd.f32 %v1286_v14, %v1285_v1  ;;  %v1278_v48 = vmul.f32 0.125, %v1277_v0 }
0x1231   : > { %v1461_v17 = vadd.f32 %v1460_v40, %v1459_v23  ;;  %v3072_v29 = vrot.slane %v3310_v10, 4  ;;  %v2262_v46 = vadd.f32 %v2261_v19, %v2260_v27  ;;  %v3063_v28 = vadd.f32 %v3062_v61, %v3061_v5 }
0x1232   : > { %v1471_v60 = vadd.f32 %v1470_v4, %v1469_v55  ;;  %v2272_v52 = vadd.f32 %v2271_v51, %v2270_v21  ;;  %v3083_v49 = vmul.f32 %v3311_v53, %v1287_v26  ;;  %v3081_v15 = vmul.f32 %v3311_v53, %v1278_v48 }
0x1233   : > { %v3073_v44 = vadd.f32 %v3310_v10, %v3072_v29  ;;  %v1462_v41 = vmul.f32 0.125, %v1461_v17  ;;  %v2263_v18 = vrot.slane %v2262_v46, 1  ;;  %v3064_v24 = vrot.slane %v3063_v28, 2 }
0x1234   : > { %v2273_v12 = vrot.slane %v2272_v52, 1  ;;  %v3090_v3 = vmul.f32 %v3312_v7, %v1471_v60 }
0x1235   : > { %v3074_v13 = vrot.slane %v3073_v44, 2  ;;  %v2264_v43 = vadd.f32 %v2263_v18, %v2262_v46  ;;  %v3065_v9 = vadd.f32 %v3064_v24, %v3063_v28  ;;  %v3088_v35 = vmul.f32 %v3312_v7, %v1462_v41 }
0x1236   : > { %v2274_v50 = vadd.f32 %v2273_v12, %v2272_v52  ;;  %v3091_v45 = vadd.f32 %v3090_v3, %v3083_v49 }
0x1237   : > { %v3075_v34 = vadd.f32 %v3074_v13, %v3073_v44  ;;  %v2265_v32 = vmul.f32 0.125, %v2264_v43  ;;  %v3066_v63 = vrot.slane %v3065_v9, 1  ;;  %v3089_v31 = vadd.f32 %v3088_v35, %v3081_v15 }
0x1238   : > { %v3097_v11 = vmul.f32 %v3313_v37, %v2274_v50 }
0x1239   : > { %v3076_v33 = vrot.slane %v3075_v34, 1  ;;  %v3095_v39 = vmul.f32 %v3313_v37, %v2265_v32  ;;  %v3067_v57 = vadd.f32 %v3066_v63, %v3065_v9 }
0x123a   : > { %v3098_v56 = vadd.f32 %v3097_v11, %v3091_v45 }
0x123b   : > { %v3077_v54 = vadd.f32 %v3076_v33, %v3075_v34  ;;  %v3068_v20 = vmul.f32 0.125, %v3067_v57  ;;  %v3096_v59 = vadd.f32 %v3095_v39, %v3089_v31 }
0x123d   : > { %v3104_v25 = vmul.f32 %v3314_v2, %v3077_v54  ;;  %v3102_v42 = vmul.f32 %v3314_v2, %v3068_v20 }
0x123f   : > { %v3105_v8 = vadd.f32 %v3104_v25, %v3098_v56  ;;  %v3103_v16 = vadd.f32 %v3102_v42, %v3096_v59 }
0x1241   : > { %3107 = vst [vmem:[%s385_s22] sm:$0x1] %v3105_v8  ;;  %3106 = vst [vmem:[%s382_s25] sm:$0x1] %v3103_v16 }
0x1242 PF: > { %s20_s30 = sadd.s32 1, %s4602_s30  }
0x1243   : > { %p17_p4 = scmp.ge.s32.totalorder %s20_s30, 4  }
0x1245   :  { %19 = sbr.rel (!%p17_p4) target bundleno = 1 (0x1), region = 103 }

</bundles_post_ra>
